<compile_context>
chip_gen: v7x
topology: tpu7x:2x2x1
jax: 0.10.0
libtpu: 0.0.40
codegen_flags: <defaults>
</compile_context>

<pallas_src>
import copy
import functools

import numpy as np
import jax
import jax.numpy as jnp
from jax.experimental import pallas as pl
from jax.experimental.pallas import tpu as pltpu


# ----------------------------------------------------------------------------
# Generation-aware VMEM sizing
# ----------------------------------------------------------------------------
@functools.lru_cache(maxsize=None)
def _vmem_budgets():
    """Returns (per-row-tile byte budget, scoped vmem limit) for this chip."""
    cap = None
    try:
        info = pltpu.get_tpu_info()
        cap = getattr(info, "vmem_capacity_bytes", None)
    except Exception:
        cap = None
    if not cap:
        cap = 64 * 1024 * 1024          # conservative default (v7x per-core VMEM)
    limit = int(cap * 0.6)              # leave headroom for compiler scratch
    budget = limit // 4                 # target per-grid-step footprint
    return budget, limit


def _pick_row_tile(ho, halo, per_row_bytes, budget):
    """Largest divisor of `ho` that is a multiple of `halo`, fits the VMEM
    budget, and (when possible) yields >= 2 row tiles (megacore / pipelining).
    Returns None if no halo-compatible divisor exists."""
    cands = [d for d in range(1, ho + 1) if ho % d == 0 and d % halo == 0]
    if not cands:
        return None
    fitting = [d for d in cands if d * per_row_bytes <= budget]
    if not fitting:
        # Nothing fits the budget: fall back to the smallest halo-compatible
        # divisor (may be small, never incorrect).
        return cands[0]
    multi = [d for d in fitting if d < ho]      # prefer >= 2 row tiles
    return max(multi) if multi else max(fitting)


# ----------------------------------------------------------------------------
# Pallas kernels
# ----------------------------------------------------------------------------
def _conv_bn_relu_kernel(*refs, kh, kw, th, wo, has_halo):
    """kh x kw stride-1 conv (padding already applied) + folded-BN bias + ReLU.

    has_halo=True : refs = body (1,th,Win,C), halo (1,kh-1,Win,C),
                           w (kh, kw*C, Cout), bias (1,Cout),
                           out (1,th,wo,Cout), xslab scratch (th+kh-1,Win,C)
    has_halo=False: refs = body (1,th+kh-1,Win,C), w, bias, out

    BN scale is folded into `w`; the conv is kh accumulating MXU matmuls with
    K = kw*C, so only one row-tap im2col slab is live at a time.
    """
    if has_halo:
        xb_ref, xh_ref, w_ref, b_ref, o_ref, xslab = refs
        # Assemble the contiguous (th + kh - 1) row window once per grid step.
        xslab[0:th] = xb_ref[0]
        xslab[th:th + kh - 1] = xh_ref[0]

        def row_window(dy):
            return xslab[dy:dy + th]                      # (th, Win, C)
    else:
        xb_ref, w_ref, b_ref, o_ref = refs
        xall = xb_ref[0]                                  # (th+kh-1, Win, C)

        def row_window(dy):
            return jax.lax.slice(
                xall, (dy, 0, 0), (dy + th, xall.shape[1], xall.shape[2]))

    cin = refs[0].shape[-1]
    acc = None
    for dy in range(kh):
        win = row_window(dy)                              # (th, Win, C) bf16
        taps = [jax.lax.slice(win, (0, dx, 0), (th, dx + wo, cin))
                for dx in range(kw)]
        cols = taps[0] if kw == 1 else jnp.concatenate(taps, axis=-1)
        part = jnp.dot(cols.reshape(th * wo, kw * cin), w_ref[dy],
                       preferred_element_type=jnp.float32)   # f32 accumulation
        acc = part if acc is None else acc + part
    out = jnp.maximum(acc + b_ref[...], 0.0)              # f32 epilogue
    o_ref[0] = out.reshape(th, wo, -1).astype(o_ref.dtype)


def _matmul_bn_relu_kernel(x_ref, w_ref, b_ref, o_ref, *, k, th, wsp):
    """Per-row-tile matmul + folded-BN bias + ReLU; k sub-row matmuls for the
    ConvTranspose(k, stride=k) pixel shuffle (k=1 for plain 1x1 / downconv).
    Each sub-row result is stored directly (no jnp.stack)."""
    cin = x_ref.shape[-1]
    x2 = x_ref[0].reshape(th * wsp, cin)                  # (th*W, Cin)
    for a in range(k):
        acc = jnp.dot(x2, w_ref[a], preferred_element_type=jnp.float32)
        y = jnp.maximum(acc + b_ref[...], 0.0)
        o_ref[0, :, a, :, :] = y.reshape(th, wsp, -1).astype(o_ref.dtype)


# ----------------------------------------------------------------------------
# Wrappers (layout glue in plain JAX, compute in Pallas)
# ----------------------------------------------------------------------------
def conv3x3_bn_relu(x, w_prep, bias, stride, out_dtype=jnp.bfloat16):
    """ZeroPad2d(1) + Conv2d(k=3, stride in {1,2}, bias=False) + BN + ReLU."""
    x = x.astype(jnp.bfloat16)
    B, H, W, Cin = x.shape
    Cout = w_prep.shape[-1]
    # TODO(synk): the ZeroPad2d(1) (and stride-2 space-to-depth) is still a
    # wrapper-level XLA pass (one extra HBM round trip per layer); writing the
    # previous layer's output into the interior of a padded buffer via an
    # offset out_spec / input_output_aliases would remove it.
    xp = jnp.pad(x, ((0, 0), (1, 1), (1, 1), (0, 0)))
    if stride == 1:
        kh = kw = 3
        xin = xp                                              # (B, H+2, W+2, Cin)
    elif stride == 2:
        assert H % 2 == 0 and W % 2 == 0
        kh = kw = 2
        Hp, Wp = H + 2, W + 2
        # space-to-depth(2): stride-2 3x3 conv -> stride-1 2x2 conv on 4*Cin.
        xin = (xp.reshape(B, Hp // 2, 2, Wp // 2, 2, Cin)
                 .transpose(0, 1, 3, 2, 4, 5)
                 .reshape(B, Hp // 2, Wp // 2, 4 * Cin))
    else:
        raise NotImplementedError("LAYER_STRIDES entries must be 1 or 2")

    _, Hin, Win, Ce = xin.shape
    Ho, Wo = Hin - kh + 1, Win - kw + 1
    halo = kh - 1
    assert w_prep.shape == (kh, kw * Ce, Cout), (w_prep.shape, kh, kw, Ce, Cout)
    out_b = jnp.dtype(out_dtype).itemsize

    budget, vmem_limit = _vmem_budgets()
    per_row = (3 * Win * Ce * 2            # 2 pipelined input buffers + row slab
               + Wo * kw * Ce * 2          # per-row-tap im2col slab (bf16)
               + 2 * Wo * Cout * 4         # f32 accumulator + epilogue temp
               + 2 * Wo * Cout * out_b)    # pipelined output buffers
    th = _pick_row_tile(Ho, halo, per_row, budget)
    has_halo = th is not None
    if not has_halo:                       # rare corner case: untiled fallback
        th = Ho

    if has_halo:
        hstep = th // halo
        grid = (B, Ho // th)
        in_specs = [
            pl.BlockSpec((1, th, Win, Ce), lambda b, t: (b, t, 0, 0)),
            pl.BlockSpec((1, halo, Win, Ce),
                         lambda b, t: (b, (t + 1) * hstep, 0, 0)),
        ]
        operands = [xin, xin]
        scratch = [pltpu.VMEM((th + halo, Win, Ce), jnp.bfloat16)]
    else:
        grid = (B, 1)
        in_specs = [pl.BlockSpec((1, Hin, Win, Ce), lambda b, t: (b, 0, 0, 0))]
        operands = [xin]
        scratch = []
    in_specs += [pl.BlockSpec((kh, kw * Ce, Cout), lambda b, t: (0, 0, 0)),
                 pl.BlockSpec((1, Cout), lambda b, t: (0, 0))]
    operands += [w_prep, bias]

    flops = 2 * B * Ho * Wo * (kh * kw * Ce) * Cout
    bytes_acc = (xin.size * 2 + w_prep.size * 2
                 + B * Ho * Wo * Cout * out_b + 4 * Cout)

    return pl.pallas_call(
        functools.partial(_conv_bn_relu_kernel, kh=kh, kw=kw, th=th, wo=Wo,
                          has_halo=has_halo),
        out_shape=jax.ShapeDtypeStruct((B, Ho, Wo, Cout), out_dtype),
        grid=grid,
        in_specs=in_specs,
        out_specs=pl.BlockSpec((1, th, Wo, Cout), lambda b, t: (b, t, 0, 0)),
        scratch_shapes=scratch,
        compiler_params=pltpu.CompilerParams(
            dimension_semantics=("parallel", "parallel"),
            vmem_limit_bytes=vmem_limit),
        cost_estimate=pl.CostEstimate(flops=int(flops), transcendentals=0,
                                      bytes_accessed=int(bytes_acc)),
    )(*operands)


def _matmul_bn_relu(x, w_prep, bias, k, out_dtype=jnp.bfloat16):
    """Row-tiled (TH*W, Cin) @ (Cin, k*Cout) x k sub-rows, + BN bias + ReLU.

    Output array is (B, H, k, W, k*Cout) so the caller's reshape to
    (B, H*k, W*k, Cout) is a free (contiguous) reshape -- no HBM transpose.
    """
    x = x.astype(jnp.bfloat16)
    B, H, W, Cin = x.shape
    kcout = w_prep.shape[-1]
    cout = kcout // k
    out_b = jnp.dtype(out_dtype).itemsize

    budget, vmem_limit = _vmem_budgets()
    per_row = (2 * W * Cin * 2             # pipelined input buffers
               + 2 * W * kcout * 4         # f32 accumulator + epilogue temp
               + 2 * k * W * kcout * out_b)
    th = _pick_row_tile(H, 1, per_row, budget) or H

    flops = 2 * B * H * W * Cin * kcout * k
    bytes_acc = (x.size * 2 + w_prep.size * 2
                 + B * H * k * W * kcout * out_b + 4 * kcout)

    out5 = pl.pallas_call(
        functools.partial(_matmul_bn_relu_kernel, k=k, th=th, wsp=W),
        out_shape=jax.ShapeDtypeStruct((B, H, k, W, kcout), out_dtype),
        grid=(B, H // th),
        in_specs=[
            pl.BlockSpec((1, th, W, Cin), lambda b, t: (b, t, 0, 0)),
            pl.BlockSpec((k, Cin, kcout), lambda b, t: (0, 0, 0)),
            pl.BlockSpec((1, kcout), lambda b, t: (0, 0)),
        ],
        out_specs=pl.BlockSpec((1, th, k, W, kcout),
                               lambda b, t: (b, t, 0, 0, 0)),
        compiler_params=pltpu.CompilerParams(
            dimension_semantics=("parallel", "parallel"),
            vmem_limit_bytes=vmem_limit),
        cost_estimate=pl.CostEstimate(flops=int(flops), transcendentals=0,
                                      bytes_accessed=int(bytes_acc)),
    )(x, w_prep, bias)
    return out5.reshape(B, H * k, W * k, cout)       # free reshape, no transpose


def deconv_bn_relu(x, w_prep, bias_t, k, out_dtype=jnp.bfloat16):
    """ConvTranspose2d(kernel=k, stride=k, bias=False) + BN + ReLU."""
    return _matmul_bn_relu(x, w_prep, bias_t, k, out_dtype)


def downconv_bn_relu(x, w_prep, bias, kd, out_dtype=jnp.bfloat16):
    """Conv2d(kernel=kd, stride=kd, bias=False) + BN + ReLU (fractional
    UPSAMPLE_STRIDES branch) via space-to-depth + matmul."""
    B, H, W, Cin = x.shape
    Ho, Wo = H // kd, W // kd
    xs = (x.reshape(B, Ho, kd, Wo, kd, Cin)
           .transpose(0, 1, 3, 2, 4, 5)
           .reshape(B, Ho, Wo, kd * kd * Cin))
    return _matmul_bn_relu(xs, w_prep, bias, 1, out_dtype)


# ----------------------------------------------------------------------------
# Weight preparation (done once at __init__, BN scale folded, stored in bf16)
# ----------------------------------------------------------------------------
def _prep_conv3x3_weight(w33, scale, stride):
    """(3,3,cin,cout) f32 + BN scale -> (kh, kw*Ce, cout) bf16 kernel weight
    (scale folded) and the scale-folded HWIO bf16 weight for the reference."""
    w33 = np.asarray(w33, np.float32) * np.asarray(scale, np.float32)[None, None, None, :]
    cin, cout = w33.shape[2], w33.shape[3]
    if stride == 1:
        wp = w33.reshape(3, 3 * cin, cout)                 # rows within dy: (dx, ci)
    else:   # stride 2: 2x2 taps over space-to-depth channels (b, py, px, ci)
        w4 = np.zeros((2, 2, 2, 2, cin, cout), np.float32)
        for a in range(2):
            for b in range(2):
                for py in range(2):
                    for px in range(2):
                        dy, dx = 2 * a + py, 2 * b + px
                        if dy < 3 and dx < 3:
                            w4[a, b, py, px] = w33[dy, dx]
        wp = w4.reshape(2, 8 * cin, cout)                  # rows within a: (b,py,px,ci)
    return jnp.asarray(wp, jnp.bfloat16), jnp.asarray(w33, jnp.bfloat16)


def _prep_deconv_weight(key, cin, cout, k, scale):
    """ConvTranspose weight (cin,cout,k,k) f32 + BN scale ->
    kernel weight (k, cin, k*cout) bf16 (cols = (b_sub, co)) and the
    scale-folded original-form bf16 weight for the reference."""
    wt = jax.random.normal(key, (cin, cout, k, k), jnp.float32) / np.sqrt(cin)
    wt_f = wt * scale[None, :, None, None]
    wp = jnp.transpose(wt_f, (2, 0, 3, 1)).reshape(k, cin, k * cout)
    return wp.astype(jnp.bfloat16), wt_f.astype(jnp.bfloat16)


# ----------------------------------------------------------------------------
# Module
# ----------------------------------------------------------------------------
class BaseBEVBackboneMIMOPallas:
    def __init__(self, model_cfg, input_channels, key):
        self.model_cfg = model_cfg
        self.NUM_HEADS = model_cfg.get('NUM_HEADS')
        self.INPUT_REPETITION = model_cfg.get('INPUT_REPETITION')
        self.BATCH_REPETITION = model_cfg.get('BATCH_REPETITION')
        # seeded for deterministic runs (the original uses an unseeded rng)
        self.rng = np.random.default_rng(0)

        input_channels = input_channels * self.NUM_HEADS
        layer_nums = list(model_cfg.get('LAYER_NUMS', []) or [])
        layer_strides = list(model_cfg.get('LAYER_STRIDES', []) or [])
        num_filters = list(model_cfg.get('NUM_FILTERS', []) or [])
        upsample_strides = list(model_cfg.get('UPSAMPLE_STRIDES', []) or [])
        num_upsample_filters = list(model_cfg.get('NUM_UPSAMPLE_FILTERS', []) or [])
        assert len(layer_nums) == len(layer_strides) == len(num_filters)
        assert len(upsample_strides) == len(num_upsample_filters)

        num_levels = len(layer_nums)
        c_in_list = [input_channels, *num_filters[:-1]]
        self.num_levels = num_levels

        keys = iter(jax.random.split(key, 512))

        def bn_params(k, c):
            k1, k2, k3, k4 = jax.random.split(k, 4)
            gamma = 1.0 + 0.1 * jax.random.normal(k1, (c,), jnp.float32)
            beta = 0.1 * jax.random.normal(k2, (c,), jnp.float32)
            mean = 0.1 * jax.random.normal(k3, (c,), jnp.float32)
            var = 1.0 + 0.1 * jnp.abs(jax.random.normal(k4, (c,), jnp.float32))
            scale = gamma / jnp.sqrt(var + 1e-3)   # eps = 0.001 (matches module)
            bias = beta - mean * scale
            return scale, bias

        self.blocks = []     # per level: list of conv-layer dicts
        self.deblocks = []   # per level: deblock dicts
        for lvl in range(num_levels):
            cin, cout = c_in_list[lvl], num_filters[lvl]
            stride0 = int(layer_strides[lvl])
            layers = []
            w33 = jax.random.normal(next(keys), (3, 3, cin, cout),
                                    jnp.float32) / np.sqrt(9 * cin)
            s, b = bn_params(next(keys), cout)
            wp, wref = _prep_conv3x3_weight(w33, s, stride0)
            layers.append(dict(w=wp, w_ref=wref, bias=b[None, :], stride=stride0))
            for _ in range(layer_nums[lvl]):
                w33 = jax.random.normal(next(keys), (3, 3, cout, cout),
                                        jnp.float32) / np.sqrt(9 * cout)
                s, b = bn_params(next(keys), cout)
                wp, wref = _prep_conv3x3_weight(w33, s, 1)
                layers.append(dict(w=wp, w_ref=wref, bias=b[None, :], stride=1))
            self.blocks.append(layers)

            if len(upsample_strides) > 0:
                stride = upsample_strides[lvl]
                cu = num_upsample_filters[lvl]
                s, b = bn_params(next(keys), cu)
                if stride >= 1:
                    k_up = int(stride)
                    wp, wref = _prep_deconv_weight(next(keys), cout, cu, k_up, s)
                    self.deblocks.append(dict(
                        kind='deconv', w=wp, w_ref=wref, k=k_up,
                        bias=jnp.tile(b, k_up)[None, :],   # pre-tiled (1, k*Cout)
                        bias_vec=b))
                else:
                    k_dn = int(np.round(1.0 / stride))
                    wd = jax.random.normal(next(keys), (k_dn, k_dn, cout, cu),
                                           jnp.float32) / np.sqrt(k_dn * k_dn * cout)
                    wdf = wd * s[None, None, None, :]
                    self.deblocks.append(dict(
                        kind='downconv',
                        w=wdf.reshape(1, k_dn * k_dn * cout, cu).astype(jnp.bfloat16),
                        w_ref=wdf.astype(jnp.bfloat16),
                        k=k_dn, bias=b[None, :], bias_vec=b))

        c_in_total = int(sum(num_upsample_filters))
        if len(upsample_strides) > num_levels:
            k_up = int(upsample_strides[-1])
            s, b = bn_params(next(keys), c_in_total)
            wp, wref = _prep_deconv_weight(next(keys), c_in_total, c_in_total,
                                           k_up, s)
            self.deblocks.append(dict(kind='deconv', w=wp, w_ref=wref, k=k_up,
                                      bias=jnp.tile(b, k_up)[None, :],
                                      bias_vec=b))
        self.num_bev_features = c_in_total

    def forward(self, data_dict, training=False):
        batch_size = data_dict['batch_size']
        rep = self.BATCH_REPETITION if training else 1

        # MIMO frame shuffling (host-side numpy, mirrors the original logic)
        main_shuffle = np.tile(np.arange(batch_size), rep)
        self.rng.shuffle(main_shuffle)
        to_shuffle = int(len(main_shuffle) * (1.0 - self.INPUT_REPETITION))
        frame_list = []
        for _ in range(self.NUM_HEADS):
            rand_portion = copy.deepcopy(main_shuffle[:to_shuffle])
            self.rng.shuffle(rand_portion)
            frame_list.append(np.concatenate([rand_portion, main_shuffle[to_shuffle:]]))
        frame_list = np.transpose(frame_list)            # (B*rep, NUM_HEADS)

        sf = data_dict['spatial_features']               # (B, C, H, W) NCHW
        gt = data_dict['gt_boxes']
        C, H, W = int(sf.shape[1]), int(sf.shape[2]), int(sf.shape[3])
        brep = frame_list.shape[0]

        # single fused gather instead of a python loop of concat/stack
        idx = jnp.asarray(frame_list.reshape(-1), dtype=jnp.int32)
        feats = jnp.take(sf, idx, axis=0)                # (B*rep*NH, C, H, W)
        x_nchw = feats.reshape(brep, self.NUM_HEADS * C, H, W)

        data_dict['batch_size'] = batch_size * self.NUM_HEADS * rep
        data_dict['gt_boxes'] = jnp.take(gt, idx, axis=0)
        data_dict['spatial_features'] = x_nchw

        # NCHW -> NHWC, bf16 activations for the kernels
        x = jnp.transpose(x_nchw, (0, 2, 3, 1)).astype(jnp.bfloat16)

        ups = []
        for i in range(self.num_levels):
            for layer in self.blocks[i]:
                x = conv3x3_bn_relu(x, layer['w'], layer['bias'], layer['stride'])
            # NOTE: the original builds ret_dict['spatial_features_%dx'] locally
            # but never returns it (dead code), so we skip those NCHW copies.
            if len(self.deblocks) > 0:
                db = self.deblocks[i]
                if db['kind'] == 'deconv':
                    ups.append(deconv_bn_relu(x, db['w'], db['bias'], db['k']))
                else:
                    ups.append(downconv_bn_relu(x, db['w'], db['bias'], db['k']))
            else:
                ups.append(x)

        if len(ups) > 1:
            x = jnp.concatenate(ups, axis=-1)
        elif len(ups) == 1:
            x = ups[0]
        if len(self.deblocks) > self.num_levels:
            db = self.deblocks[-1]
            x = deconv_bn_relu(x, db['w'], db['bias'], db['k'])

        # back to NCHW, f32 for downstream heads
        data_dict['spatial_features_2d'] = jnp.transpose(
            x.astype(jnp.float32), (0, 3, 1, 2))
        return data_dict


# ----------------------------------------------------------------------------
# Pure-JAX reference (same bf16 scale-folded weights) for validation
# ----------------------------------------------------------------------------
def _reference_deblock(db, x):
    if db['kind'] == 'deconv':
        k = db['k']
        w = db['w_ref'].astype(jnp.float32)               # (cin, cout, k, k)
        y = jnp.einsum('bhwc,cokl->bhkwlo', x.astype(jnp.float32), w)
        y = jnp.maximum(y + db['bias_vec'], 0.0)
        B, H, _, W, _, cout = y.shape
        return y.reshape(B, H * k, W * k, cout).astype(jnp.bfloat16)
    kd = db['k']
    y = jax.lax.conv_general_dilated(
        x.astype(jnp.float32), db['w_ref'].astype(jnp.float32),
        window_strides=(kd, kd), padding='VALID',
        dimension_numbers=('NHWC', 'HWIO', 'NHWC'))
    return jnp.maximum(y + db['bias_vec'], 0.0).astype(jnp.bfloat16)


def reference_forward(model, x_nchw):
    x = jnp.transpose(x_nchw, (0, 2, 3, 1)).astype(jnp.bfloat16)
    ups = []
    for i in range(model.num_levels):
        for layer in model.blocks[i]:
            s = layer['stride']
            xp = jnp.pad(x.astype(jnp.float32), ((0, 0), (1, 1), (1, 1), (0, 0)))
            y = jax.lax.conv_general_dilated(
                xp, layer['w_ref'].astype(jnp.float32),
                window_strides=(s, s), padding='VALID',
                dimension_numbers=('NHWC', 'HWIO', 'NHWC'))
            x = jnp.maximum(y + layer['bias'][0], 0.0).astype(jnp.bfloat16)
        if len(model.deblocks) > 0:
            ups.append(_reference_deblock(model.deblocks[i], x))
        else:
            ups.append(x)
    x = jnp.concatenate(ups, axis=-1) if len(ups) > 1 else ups[0]
    if len(model.deblocks) > model.num_levels:
        x = _reference_deblock(model.deblocks[-1], x)
    return jnp.transpose(x.astype(jnp.float32), (0, 3, 1, 2))


# ----------------------------------------------------------------------------
# Demo
# ----------------------------------------------------------------------------
if __name__ == "__main__":
    class Cfg(dict):
        def get(self, k, default=None):
            return dict.get(self, k, default)

    model_cfg = Cfg(
        NUM_HEADS=2,
        INPUT_REPETITION=0.5,
        BATCH_REPETITION=2,
        LAYER_NUMS=[1, 1],
        LAYER_STRIDES=[1, 2],
        NUM_FILTERS=[16, 32],
        UPSAMPLE_STRIDES=[1, 2],
        NUM_UPSAMPLE_FILTERS=[16, 16],
    )

    key = jax.random.PRNGKey(0)
    model = BaseBEVBackboneMIMOPallas(model_cfg, input_channels=4, key=key)

    B, C, H, W = 2, 4, 16, 16
    k1, k2 = jax.random.split(jax.random.PRNGKey(0))
    spatial_features = jax.random.normal(k1, (B, C, H, W), jnp.float32)
    gt_boxes = jax.random.normal(k2, (B, 5, 8), jnp.float32)

    data_dict = {
        'batch_size': B,
        'spatial_features': spatial_features,
        'gt_boxes': gt_boxes,
    }
    out = model.forward(data_dict, training=False)  # eval-mode forward
    x2d = jax.block_until_ready(out['spatial_features_2d'])

    assert x2d.shape == (B, model.num_bev_features, H, W), x2d.shape
    assert bool(jnp.all(jnp.isfinite(x2d)))
    assert bool(jnp.all(x2d >= 0.0))  # every branch ends in ReLU

    # Validate against a pure-JAX reference built from the same bf16
    # scale-folded weights (explicit tolerance, per review).
    ref = jax.block_until_ready(reference_forward(model, out['spatial_features']))
    max_err = float(jnp.max(jnp.abs(x2d - ref)))
    ref_mag = float(jnp.max(jnp.abs(ref))) + 1e-3
    assert max_err <= 0.05 * ref_mag, (max_err, ref_mag)

    print("KERNEL_OK")
</pallas_src>

<mosaic_0001>
module attributes {stable_mosaic.version = 11 : i64} {
  func.func @_conv_bn_relu_kernel(%arg0: i32, %arg1: i32, %arg2: memref<1x8x18x8xbf16, #tpu.memory_space<vmem>>, %arg3: memref<1x2x18x8xbf16, #tpu.memory_space<vmem>>, %arg4: memref<3x24x16xbf16, #tpu.memory_space<vmem>>, %arg5: memref<1x16xf32, #tpu.memory_space<vmem>>, %arg6: memref<1x8x16x16xbf16, #tpu.memory_space<vmem>>, %arg7: memref<10x18x8xbf16, #tpu.memory_space<vmem>>) attributes {dimension_semantics = [#tpu.dimension_semantics<parallel>, #tpu.dimension_semantics<parallel>], iteration_bounds = array<i64: 2, 2>, scalar_prefetch = 0 : i64, scratch_operands = 1 : i64, tpu.core_type = #tpu.core_type<tc>, window_params = [{transform_indices = @transform_0, window_bounds = array<i64: 1, 8, 18, 8>}, {transform_indices = @transform_1, window_bounds = array<i64: 1, 2, 18, 8>}, {pipeline_mode = #tpu.pipeline_mode<synchronous>, transform_indices = @transform_2, window_bounds = array<i64: 3, 24, 16>}, {pipeline_mode = #tpu.pipeline_mode<synchronous>, transform_indices = @transform_3, window_bounds = array<i64: 1, 16>}, {transform_indices = @transform_4, window_bounds = array<i64: 1, 8, 16, 16>}]} {
    %c0 = arith.constant 0 : index
    %c0_0 = arith.constant 0 : index
    %c0_1 = arith.constant 0 : index
    %c0_2 = arith.constant 0 : index
    %0 = vector.load %arg2[%c0, %c0_0, %c0_1, %c0_2] : memref<1x8x18x8xbf16, #tpu.memory_space<vmem>>, vector<1x8x18x8xbf16>
    %1 = vector.shape_cast %0 : vector<1x8x18x8xbf16> to vector<8x18x8xbf16>
    %c0_3 = arith.constant 0 : index
    %c0_4 = arith.constant 0 : index
    %c0_5 = arith.constant 0 : index
    %2 = vector.load %arg7[%c0_3, %c0_4, %c0_5] : memref<10x18x8xbf16, #tpu.memory_space<vmem>>, vector<8x18x8xbf16>
    tpu.vector_store %arg7[%c0_3, %c0_4, %c0_5], %1 {strides = array<i32>} : memref<10x18x8xbf16, #tpu.memory_space<vmem>>, vector<8x18x8xbf16>,
    %c0_6 = arith.constant 0 : index
    %c0_7 = arith.constant 0 : index
    %c0_8 = arith.constant 0 : index
    %c0_9 = arith.constant 0 : index
    %3 = vector.load %arg3[%c0_6, %c0_7, %c0_8, %c0_9] : memref<1x2x18x8xbf16, #tpu.memory_space<vmem>>, vector<1x2x18x8xbf16>
    %4 = vector.shape_cast %3 : vector<1x2x18x8xbf16> to vector<2x18x8xbf16>
    %c8 = arith.constant 8 : index
    %c0_10 = arith.constant 0 : index
    %c0_11 = arith.constant 0 : index
    %5 = vector.load %arg7[%c8, %c0_10, %c0_11] : memref<10x18x8xbf16, #tpu.memory_space<vmem>>, vector<2x18x8xbf16>
    tpu.vector_store %arg7[%c8, %c0_10, %c0_11], %4 {strides = array<i32>} : memref<10x18x8xbf16, #tpu.memory_space<vmem>>, vector<2x18x8xbf16>,
    %c0_12 = arith.constant 0 : index
    %c0_13 = arith.constant 0 : index
    %c0_14 = arith.constant 0 : index
    %6 = vector.load %arg7[%c0_12, %c0_13, %c0_14] : memref<10x18x8xbf16, #tpu.memory_space<vmem>>, vector<8x18x8xbf16>
    %7 = vector.extract_strided_slice %6 {offsets = [0, 0, 0], sizes = [8, 16, 8], strides = [1, 1, 1]} : vector<8x18x8xbf16> to vector<8x16x8xbf16>
    %8 = vector.extract_strided_slice %6 {offsets = [0, 1, 0], sizes = [8, 16, 8], strides = [1, 1, 1]} : vector<8x18x8xbf16> to vector<8x16x8xbf16>
    %9 = vector.extract_strided_slice %6 {offsets = [0, 2, 0], sizes = [8, 16, 8], strides = [1, 1, 1]} : vector<8x18x8xbf16> to vector<8x16x8xbf16>
    %10 = tpu.concatenate %7, %8, %9 in 2 : vector<8x16x8xbf16>, vector<8x16x8xbf16>, vector<8x16x8xbf16> -> vector<8x16x24xbf16>
    %11 = vector.shape_cast %10 : vector<8x16x24xbf16> to vector<128x24xbf16>
    %c0_15 = arith.constant 0 : index
    %c0_16 = arith.constant 0 : index
    %c0_17 = arith.constant 0 : index
    %12 = vector.load %arg4[%c0_15, %c0_16, %c0_17] : memref<3x24x16xbf16, #tpu.memory_space<vmem>>, vector<1x24x16xbf16>
    %13 = vector.shape_cast %12 : vector<1x24x16xbf16> to vector<24x16xbf16>
    %cst = arith.constant dense<0.000000e+00> : vector<128x16xf32>
    %14 = tpu.matmul %11, %13, %cst {dimension_numbers = #tpu.dot_dimension_numbers<[1], [0], [0], [1], [0, 0, 1, 1], [], []>} : vector<128x24xbf16>, vector<24x16xbf16>, vector<128x16xf32> -> vector<128x16xf32>
    %c1 = arith.constant 1 : index
    %c0_18 = arith.constant 0 : index
    %c0_19 = arith.constant 0 : index
    %15 = vector.load %arg7[%c1, %c0_18, %c0_19] : memref<10x18x8xbf16, #tpu.memory_space<vmem>>, vector<8x18x8xbf16>
    %16 = vector.extract_strided_slice %15 {offsets = [0, 0, 0], sizes = [8, 16, 8], strides = [1, 1, 1]} : vector<8x18x8xbf16> to vector<8x16x8xbf16>
    %17 = vector.extract_strided_slice %15 {offsets = [0, 1, 0], sizes = [8, 16, 8], strides = [1, 1, 1]} : vector<8x18x8xbf16> to vector<8x16x8xbf16>
    %18 = vector.extract_strided_slice %15 {offsets = [0, 2, 0], sizes = [8, 16, 8], strides = [1, 1, 1]} : vector<8x18x8xbf16> to vector<8x16x8xbf16>
    %19 = tpu.concatenate %16, %17, %18 in 2 : vector<8x16x8xbf16>, vector<8x16x8xbf16>, vector<8x16x8xbf16> -> vector<8x16x24xbf16>
    %20 = vector.shape_cast %19 : vector<8x16x24xbf16> to vector<128x24xbf16>
    %c1_20 = arith.constant 1 : index
    %c0_21 = arith.constant 0 : index
    %c0_22 = arith.constant 0 : index
    %21 = vector.load %arg4[%c1_20, %c0_21, %c0_22] : memref<3x24x16xbf16, #tpu.memory_space<vmem>>, vector<1x24x16xbf16>
    %22 = vector.shape_cast %21 : vector<1x24x16xbf16> to vector<24x16xbf16>
    %cst_23 = arith.constant dense<0.000000e+00> : vector<128x16xf32>
    %23 = tpu.matmul %20, %22, %cst_23 {dimension_numbers = #tpu.dot_dimension_numbers<[1], [0], [0], [1], [0, 0, 1, 1], [], []>} : vector<128x24xbf16>, vector<24x16xbf16>, vector<128x16xf32> -> vector<128x16xf32>
    %24 = arith.addf %14, %23 : vector<128x16xf32>
    %c2 = arith.constant 2 : index
    %c0_24 = arith.constant 0 : index
    %c0_25 = arith.constant 0 : index
    %25 = vector.load %arg7[%c2, %c0_24, %c0_25] : memref<10x18x8xbf16, #tpu.memory_space<vmem>>, vector<8x18x8xbf16>
    %26 = vector.extract_strided_slice %25 {offsets = [0, 0, 0], sizes = [8, 16, 8], strides = [1, 1, 1]} : vector<8x18x8xbf16> to vector<8x16x8xbf16>
    %27 = vector.extract_strided_slice %25 {offsets = [0, 1, 0], sizes = [8, 16, 8], strides = [1, 1, 1]} : vector<8x18x8xbf16> to vector<8x16x8xbf16>
    %28 = vector.extract_strided_slice %25 {offsets = [0, 2, 0], sizes = [8, 16, 8], strides = [1, 1, 1]} : vector<8x18x8xbf16> to vector<8x16x8xbf16>
    %29 = tpu.concatenate %26, %27, %28 in 2 : vector<8x16x8xbf16>, vector<8x16x8xbf16>, vector<8x16x8xbf16> -> vector<8x16x24xbf16>
    %30 = vector.shape_cast %29 : vector<8x16x24xbf16> to vector<128x24xbf16>
    %c2_26 = arith.constant 2 : index
    %c0_27 = arith.constant 0 : index
    %c0_28 = arith.constant 0 : index
    %31 = vector.load %arg4[%c2_26, %c0_27, %c0_28] : memref<3x24x16xbf16, #tpu.memory_space<vmem>>, vector<1x24x16xbf16>
    %32 = vector.shape_cast %31 : vector<1x24x16xbf16> to vector<24x16xbf16>
    %cst_29 = arith.constant dense<0.000000e+00> : vector<128x16xf32>
    %33 = tpu.matmul %30, %32, %cst_29 {dimension_numbers = #tpu.dot_dimension_numbers<[1], [0], [0], [1], [0, 0, 1, 1], [], []>} : vector<128x24xbf16>, vector<24x16xbf16>, vector<128x16xf32> -> vector<128x16xf32>
    %34 = arith.addf %24, %33 : vector<128x16xf32>
    %c0_30 = arith.constant 0 : index
    %c0_31 = arith.constant 0 : index
    %35 = vector.load %arg5[%c0_30, %c0_31] : memref<1x16xf32, #tpu.memory_space<vmem>>, vector<1x16xf32>
    %36 = vector.broadcast %35 : vector<1x16xf32> to vector<128x16xf32>
    %37 = arith.addf %34, %36 : vector<128x16xf32>
    %cst_32 = arith.constant 0.000000e+00 : f32
    %38 = vector.broadcast %cst_32 : f32 to vector<128x16xf32>
    %39 = arith.maximumf %37, %38 : vector<128x16xf32>
    %40 = vector.shape_cast %39 : vector<128x16xf32> to vector<8x16x16xf32>
    %41 = arith.truncf %40 : vector<8x16x16xf32> to vector<8x16x16xbf16>
    %c0_33 = arith.constant 0 : index
    %c0_34 = arith.constant 0 : index
    %c0_35 = arith.constant 0 : index
    %c0_36 = arith.constant 0 : index
    %42 = vector.load %arg6[%c0_33, %c0_34, %c0_35, %c0_36] : memref<1x8x16x16xbf16, #tpu.memory_space<vmem>>, vector<1x8x16x16xbf16>
    %43 = vector.shape_cast %42 : vector<1x8x16x16xbf16> to vector<8x16x16xbf16>
    %44 = vector.shape_cast %41 : vector<8x16x16xbf16> to vector<1x8x16x16xbf16>
    tpu.vector_store %arg6[%c0_33, %c0_34, %c0_35, %c0_36], %44 {strides = array<i32>} : memref<1x8x16x16xbf16, #tpu.memory_space<vmem>>, vector<1x8x16x16xbf16>,
    return
  }
  func.func @transform_0(%arg0: i32, %arg1: i32) -> (i32, i32, i32, i32) {
    %c0_i32 = arith.constant 0 : i32
    %c0_i32_0 = arith.constant 0 : i32
    %c0_i32_1 = arith.constant 0 : i32
    return %arg0, %arg1, %c0_i32, %c0_i32_0 : i32, i32, i32, i32
  }
  func.func @transform_1(%arg0: i32, %arg1: i32) -> (i32, i32, i32, i32) {
    %c1_i32 = arith.constant 1 : i32
    %0 = arith.addi %arg1, %c1_i32 : i32
    %c4_i32 = arith.constant 4 : i32
    %1 = arith.muli %0, %c4_i32 : i32
    %c0_i32 = arith.constant 0 : i32
    %c0_i32_0 = arith.constant 0 : i32
    %c0_i32_1 = arith.constant 0 : i32
    return %arg0, %1, %c0_i32, %c0_i32_0 : i32, i32, i32, i32
  }
  func.func @transform_2(%arg0: i32, %arg1: i32) -> (i32, i32, i32) {
    %c0_i32 = arith.constant 0 : i32
    %c0_i32_0 = arith.constant 0 : i32
    %c0_i32_1 = arith.constant 0 : i32
    %c0_i32_2 = arith.constant 0 : i32
    return %c0_i32, %c0_i32_0, %c0_i32_1 : i32, i32, i32
  }
  func.func @transform_3(%arg0: i32, %arg1: i32) -> (i32, i32) {
    %c0_i32 = arith.constant 0 : i32
    %c0_i32_0 = arith.constant 0 : i32
    %c0_i32_1 = arith.constant 0 : i32
    return %c0_i32, %c0_i32_0 : i32, i32
  }
  func.func @transform_4(%arg0: i32, %arg1: i32) -> (i32, i32, i32, i32) {
    %c0_i32 = arith.constant 0 : i32
    %c0_i32_0 = arith.constant 0 : i32
    %c0_i32_1 = arith.constant 0 : i32
    return %arg0, %arg1, %c0_i32, %c0_i32_0 : i32, i32, i32, i32
  }
}

</mosaic_0001>

<bundles_post_ra>
// kernel: tpu_custom_call.1
= control target key start
LH: loop header
LB: loop body
LE: loop exit
PB: predicated region body
PF: predicated region fallthrough
CT: control target
= control target key end

     0   :  { %9 = vsyncpa [#allocation4], 0  ;;  %s3076_s0 = inlined_call_operand.vmem [shape: bf16[2,18,18,8], index: 0, kind: input, shape index: {}]   ;;  %s3077_s1 = inlined_call_operand.vmem [shape: bf16[2,18,18,8], index: 1, kind: input, shape index: {}]   ;;  %s3078_s2 = inlined_call_operand.vmem [shape: bf16[3,24,16], index: 2, kind: input, shape index: {}]   ;;  %s3079_s3 = inlined_call_operand.vmem [shape: f32[1,16], index: 3, kind: input, shape index: {}]   ;;  %s3080_s4 = inlined_call_operand.hbm [shape: bf16[2,16,16,16], index: 4, kind: output, shape index: {}]  }
   0x1   :  { %11 = vsyncpa [#allocation4 + $0x1], 0  ;;  %s2376_s15 = smov 0   ;;  %s2378_s16 = smov 0  }
   0x2   :  { %s2380_s17 = smov 0   ;;  %s2382_s18 = smov 0  }
   0x3   :  { %s2384_s19 = smov 0   ;;  %s2386_s20 = smov 0  }
   0x4   :  { %s2388_s21 = smov 0   ;;  %s2390_s22 = smov 0  }
   0x5 LB: > { %s1841_s23 = sadd.s32 4294967295, %s2344_s22   ;;  %s1842_s24 = sadd.s32 4294967294, %s2344_s22   ;;  %s2344_s22 = sphi %s2390_s22, %s17_s22   ;;  %s2340_s21 = sphi %s2388_s21, %s3090_s21   ;;  %s2336_s20 = sphi %s2386_s20, %s3089_s20   ;;  %s2332_s19 = sphi %s2384_s19, %s3088_s19   ;;  %s2328_s18 = sphi %s2382_s18, %s3087_s18   ;;  %s2324_s17 = sphi %s2380_s17, %s3086_s17   ;;  %s2320_s16 = sphi %s2378_s16, %s3085_s16   ;;  %s2316_s15 = sphi %s2376_s15, %s3084_s15  }
   0x6   : > { %s26_s25 = sadd.s32 1, %s2336_s20  ;;  %s29_s26 = sadd.s32 1, %s2340_s21 }
   0x7   : > { %p27_p0 = scmp.ge.s32.totalorder %s26_s25, 2  ;;  %p150_p1 = scmp.ne.s32.totalorder %s2324_s17, %s2320_s16 }
   0x8   : > { %p151_p2 = scmp.eq.s32.totalorder %s1841_s23, 3  ;;  %p156_p5 = scmp.ne.s32.totalorder %s2320_s16, %s2316_s15 }
   0x9   : > { %s3092_s25 = smov (%p27_p0, %s26_s25), 0  ;;  %s3094_s26 = smov (!%p27_p0, %s29_s26), %s2340_s21 }
   0xa   : > { %s136_s27 = ssub.s32 %s2336_s20, %s3092_s25  ;;  %p2427_p3 = por %p151_p2, %p150_p1 }
   0xb   : > { %p31_p4 = scmp.ge.s32.totalorder %s3094_s26, 2  ;;  %p157_p6 = scmp.eq.s32.totalorder %s1842_s24, 3 }
   0xc   : > { %p1847_p7 = scmp.ge.s32.totalorder %s2344_s22, 1  ;;  %p223_p9 = scmp.lt.s32.totalorder %s2344_s22, 5 }
   0xd   : > { %s3096_s26 = smov (%p31_p4, %s3094_s26), 0  ;;  %p2436_p8 = por %p157_p6, %p156_p5 }
   0xe   : > { %s135_s30 = ssub.s32 %s2340_s21, %s3096_s26  ;;  %s140_s5 = sadd.s32 1, %s2324_s17 }
   0xf   : > { %s137_s6 = sor.u32 %s136_s27, %s135_s30  ;;  %p224_p10 = pnand %p1847_p7, %p223_p9 }
  0x10   : > { %p138_p11 = scmp.eq.s32.totalorder %s137_s6, 0  ;;  %s2448_s8 = sshll.u32 (!%p224_p10), %s2328_s18, 3  ;;  %vm333_vm0 = vcmask (!%p224_p10), 60416   ;;  %vm336_vm1 = vcmask (!%p224_p10), 57344   ;;  %vm573_vm2 = vcmask (!%p224_p10), 1046528   ;;  %vm954_vm4 = vcmask (!%p224_p10), 1043456  }
  0x11   : > { %227 = sbr.rel (%p224_p10) target bundleno = 499 (0x1f3), region = 36  ;;  %p277_p12 = scmp.lt.s32.totalorder (!%p224_p10), %s2332_s19, 1  ;;  %vm460_vm3 = vsmask.f32 (!%p224_p10), 7424  ;;  %vm614_vm5 = vcmask (!%p224_p10), 64512   ;;  %vm631_vm6 = vcmask (!%p224_p10), 130048  }
  0x12   : > { %s2445_s7 = scalar_select %p138_p11, %s2324_s17, %s140_s5  }
  0x13   : > { %p279_p13 = scmp.lt.s32.totalorder (!%p224_p10), %s2448_s8, 17  ;;  %s2346_s30 = smov (!%p224_p10), 16   ;;  %vm937_vm7 = vcmask (!%p224_p10), 195584   ;;  %vm1701_vm8 = vcmask (!%p224_p10), 125952  }
  0x14   : > { %s1987_s5 = sadd.s32 (!%p224_p10), 8, %s2448_s8  ;;  %s2347_s6 = smov (!%p224_p10), 8  }
  0x15   : > { %p2577_p0 = scmp.lt.s32.totalorder (!%p224_p10), %s1987_s5, 17  ;;  %s2348_s23 = smov (!%p224_p10), [#allocation3]  }
  0x16   : > { %s2254_s24 = sshll.u32 (!%p224_p10), %s2348_s23, 4  ;;  %s2255_s24 = int_to_ptr.vmem [resolvable:$false] %s2254_s24 }
  0x18   : > { %s2453_s9 = scalar_select %p277_p12, %s2332_s19, 1 }
  0x19   : > { %s280_s10 = scalar_select %p279_p13, %s2448_s8, 17 }
  0x1a   : > { %s2119_s11 = smul.u32 54, %s2453_s9  ;;  %s3098_s5 = smov (!%p2577_p0, %s1987_s5), 17 }
  0x1b   : > { %s2118_s12 = smul.u32 3, %s280_s10  ;;  %s1985_s10 = sshll.u32 %s2328_s18, 4 }
  0x1c   : > { %s2120_s8 = smul.u32 3, %s3098_s5 }
  0x1d   : > { %s283_s13 = sadd.s32 %s2119_s11, %s2118_s12 }
  0x1e   : > { %s1850_s14 = sshll.u32 %s283_s13, 2  ;;  %s301_s12 = sadd.s32 %s2120_s8, %s2119_s11 }
  0x1f   : > { %s2462_s27 = scalar_lea.vmem %s3076_s0, %s1850_s14  ;;  %s1853_s13 = sshll.u32 %s301_s12, 2 }
  0x20   : > { %v312_v0 = vld [vmem:[%s2462_s27 + $0xc] sm:$0xf]  ;;  %v313_v1 = vld [vmem:[%s2462_s27 + $0x10] sm:$0xf]  ;;  %v314_v2 = vld [vmem:[%s2462_s27 + $0x14] sm:$0x1]  ;;  %s2638_s14 = scalar_lea.vmem %s3077_s1, %s1853_s13 }
  0x21   : > { %338 = vst.msk [vmem:[#allocation2 + $0xc] sm:$0xf] %vm333_vm0, %v312_v0  ;;  %339 = vst.msk [vmem:[#allocation2 + $0x10] sm:$0xf] %vm333_vm0, %v313_v1  ;;  %v309_v3 = vld [vmem:[%s2462_s27] sm:$0xf] }
  0x22   : > { %340 = vst.msk [vmem:[#allocation2 + $0x14] sm:$0x1] %vm336_vm1, %v314_v2  ;;  %v310_v4 = vld [vmem:[%s2462_s27 + $0x4] sm:$0xf]  ;;  %v311_v5 = vld [vmem:[%s2462_s27 + $0x8] sm:$0x1] }
  0x23   : > { %334 = vst.msk [vmem:[#allocation2] sm:$0xf] %vm333_vm0, %v309_v3  ;;  %335 = vst.msk [vmem:[#allocation2 + $0x4] sm:$0xf] %vm333_vm0, %v310_v4  ;;  %v318_v6 = vld [vmem:[%s2462_s27 + $0x24] sm:$0xf] }
  0x24   : > { %337 = vst.msk [vmem:[#allocation2 + $0x8] sm:$0x1] %vm336_vm1, %v311_v5  ;;  %v319_v7 = vld [vmem:[%s2462_s27 + $0x28] sm:$0xf]  ;;  %v320_v8 = vld [vmem:[%s2462_s27 + $0x2c] sm:$0x1] }
  0x25   : > { %344 = vst.msk [vmem:[#allocation2 + $0x24] sm:$0xf] %vm333_vm0, %v318_v6  ;;  %345 = vst.msk [vmem:[#allocation2 + $0x28] sm:$0xf] %vm333_vm0, %v319_v7  ;;  %v315_v9 = vld [vmem:[%s2462_s27 + $0x18] sm:$0xf] }
  0x26   : > { %346 = vst.msk [vmem:[#allocation2 + $0x2c] sm:$0x1] %vm336_vm1, %v320_v8  ;;  %v316_v10 = vld [vmem:[%s2462_s27 + $0x1c] sm:$0xf]  ;;  %v317_v11 = vld [vmem:[%s2462_s27 + $0x20] sm:$0x1] }
  0x27   : > { %341 = vst.msk [vmem:[#allocation2 + $0x18] sm:$0xf] %vm333_vm0, %v315_v9  ;;  %342 = vst.msk [vmem:[#allocation2 + $0x1c] sm:$0xf] %vm333_vm0, %v316_v10  ;;  %v321_v12 = vld [vmem:[%s2462_s27 + $0x30] sm:$0xf] }
  0x28   : > { %343 = vst.msk [vmem:[#allocation2 + $0x20] sm:$0x1] %vm336_vm1, %v317_v11  ;;  %v322_v13 = vld [vmem:[%s2462_s27 + $0x34] sm:$0xf]  ;;  %v323_v14 = vld [vmem:[%s2462_s27 + $0x38] sm:$0x1] }
  0x29   : > { %347 = vst.msk [vmem:[#allocation2 + $0x30] sm:$0xf] %vm333_vm0, %v321_v12  ;;  %348 = vst.msk [vmem:[#allocation2 + $0x34] sm:$0xf] %vm333_vm0, %v322_v13  ;;  %v324_v15 = vld [vmem:[%s2462_s27 + $0x3c] sm:$0xf] }
  0x2a   : > { %349 = vst.msk [vmem:[#allocation2 + $0x38] sm:$0x1] %vm336_vm1, %v323_v14  ;;  %v325_v16 = vld [vmem:[%s2462_s27 + $0x40] sm:$0xf]  ;;  %v326_v17 = vld [vmem:[%s2462_s27 + $0x44] sm:$0x1] }
  0x2b   : > { %350 = vst.msk [vmem:[#allocation2 + $0x3c] sm:$0xf] %vm333_vm0, %v324_v15  ;;  %351 = vst.msk [vmem:[#allocation2 + $0x40] sm:$0xf] %vm333_vm0, %v325_v16  ;;  %v327_v18 = vld [vmem:[%s2462_s27 + $0x48] sm:$0xf] }
  0x2c   : > { %352 = vst.msk [vmem:[#allocation2 + $0x44] sm:$0x1] %vm336_vm1, %v326_v17  ;;  %v328_v19 = vld [vmem:[%s2462_s27 + $0x4c] sm:$0xf]  ;;  %v329_v20 = vld [vmem:[%s2462_s27 + $0x50] sm:$0x1] }
  0x2d   : > { %353 = vst.msk [vmem:[#allocation2 + $0x48] sm:$0xf] %vm333_vm0, %v327_v18  ;;  %354 = vst.msk [vmem:[#allocation2 + $0x4c] sm:$0xf] %vm333_vm0, %v328_v19  ;;  %v330_v21 = vld [vmem:[%s2462_s27 + $0x54] sm:$0xf] }
  0x2e   : > { %355 = vst.msk [vmem:[#allocation2 + $0x50] sm:$0x1] %vm336_vm1, %v329_v20  ;;  %v331_v22 = vld [vmem:[%s2462_s27 + $0x58] sm:$0xf]  ;;  %v332_v23 = vld [vmem:[%s2462_s27 + $0x5c] sm:$0x1] }
  0x2f   : > { %356 = vst.msk [vmem:[#allocation2 + $0x54] sm:$0xf] %vm333_vm0, %v330_v21  ;;  %357 = vst.msk [vmem:[#allocation2 + $0x58] sm:$0xf] %vm333_vm0, %v331_v22  ;;  %v2512_v24 = vld [vmem:[#allocation2 + $0xc] sm:$0xff]   ;;  %v2516_v26 = vld [vmem:[#allocation2] sm:$0xff]  }
  0x30   : > { %358 = vst.msk [vmem:[#allocation2 + $0x5c] sm:$0x1] %vm336_vm1, %v332_v23  ;;  %v2514_v25 = vld [vmem:[#allocation2 + $0x14] ss:$0 sps:$4 sm:$0x11]   ;;  %v577_v27 = vrot.slane %v2512_v24, 1 }
  0x31   : > { %v578_v28 = vrot.slane %v2514_v25, 1  ;;  %v2199_v29 = vld [vmem:[#allocation2 + $0x8] ss:$0 sps:$4 sm:$0x11]   ;;  %v574_v31 = vrot.slane %v2516_v26, 1  ;;  %v2523_v32 = vld [vmem:[#allocation2 + $0xc] sm:$0xff]  }
  0x32   : > { %v2520_v30 = vld [vmem:[#allocation2 + $0x24] sm:$0xff]   ;;  %v575_v34 = vrot.slane %v2199_v29, 1  ;;  %v2526_v35 = vld [vmem:[#allocation2 + $0x2c] ss:$0 sps:$4 sm:$0x11]   ;;  %v852_v37 = vrot.slane %v2523_v32, 1 }
  0x33   : > { %v579_v33 = vsel %vm573_vm2, %v577_v27, %v578_v28  ;;  %v583_v36 = vrot.slane %v2520_v30, 1  ;;  %v584_v39 = vrot.slane %v2526_v35, 1  ;;  %v2203_v40 = vld [vmem:[#allocation2 + $0x14] ss:$0 sps:$4 sm:$0x11]   ;;  %v2535_v43 = vld [vmem:[#allocation2 + $0x18] sm:$0xff]  }
  0x34   : > { %600 = vrot.lane.b32.xlu0 %v579_v33, %s2346_s30  ;;  %v576_v38 = vsel %vm573_vm2, %v574_v31, %v575_v34  ;;  %v853_v42 = vrot.slane %v2203_v40, 1  ;;  %v2205_v44 = vld [vmem:[#allocation2 + $0x20] ss:$0 sps:$4 sm:$0x11]   ;;  %v462_v45 = vshrl.u32 %v2516_v26, 16  ;;  %v464_v46 = vshll.u32 %v2516_v26, 16 }
  0x35   : > { %598 = vrot.lane.b32.xlu1 %v576_v38, %s2346_s30  ;;  %v585_v41 = vsel %vm573_vm2, %v583_v36, %v584_v39  ;;  %v469_v47 = vshll.u32 %v2199_v29, 16  ;;  %v855_v49 = vrot.slane %v2535_v43, 1  ;;  %v856_v50 = vrot.slane %v2205_v44, 1  ;;  %v2542_v51 = vld [vmem:[#allocation2 + $0x18] sm:$0xff]   ;;  %v2549_v63 = vld [vmem:[#allocation2 + $0x24] sm:$0xff]   ;;  %v2558_v8 = vld [vmem:[#allocation2 + $0x30] sm:$0xff]  }
  0x36   : > { %v854_v48 = vsel %vm573_vm2, %v852_v37, %v853_v42  ;;  %v741_v52 = vshrl.u32 %v2523_v32, 16  ;;  %v466_v53 = vrot.slane %v464_v46, 1  ;;  %v2207_v55 = vld [vmem:[#allocation2 + $0x20] ss:$0 sps:$4 sm:$0x11]   ;;  %v743_v56 = vshll.u32 %v2523_v32, 16 }
  0x37   : > { %v471_v54 = vrot.slane %v469_v47, 1  ;;  %v857_v57 = vsel %vm573_vm2, %v855_v49, %v856_v50  ;;  %v580_v58 = vrot.slane %v2542_v51, 1  ;;  %v748_v59 = vshll.u32 %v2203_v40, 16  ;;  %v2552_v2 = vld [vmem:[#allocation2 + $0x2c] ss:$0 sps:$4 sm:$0x11]  }
  0x38   : > { %604 = vrot.lane.b32.xlu0 %v585_v41, %s2346_s30  ;;  %v467_v60 = vor.u32 %v466_v53, %v462_v45  ;;  %v581_v61 = vrot.slane %v2207_v55, 1  ;;  %v745_v62 = vrot.slane %v743_v56, 1  ;;  %v753_v0 = vshrl.u32 %v2535_v43, 16  ;;  %v2211_v14 = vld [vmem:[#allocation2 + $0x38] ss:$0 sps:$4 sm:$0x11]  }
  0x39   : > { %876 = vrot.lane.b32.xlu1 %v854_v48, %s2346_s30  ;;  %v750_v1 = vrot.slane %v748_v59, 1  ;;  %v755_v3 = vshll.u32 %v2535_v43, 16  ;;  %v760_v4 = vshll.u32 %v2205_v44, 16  ;;  %v858_v9 = vrot.slane %v2549_v63, 1  ;;  %v2584_v38 = vld [vmem:[#allocation2 + $0x18] sm:$0xff]   ;;  %s1958_s8 = sshll.u32 %s2332_s19, 5 }
  0x3a   : > { %v472_v5 = vsel %vm460_vm3, %v467_v60, %v471_v54  ;;  %v582_v6 = vsel %vm573_vm2, %v580_v58, %v581_v61  ;;  %v746_v7 = vor.u32 %v745_v62, %v741_v52  ;;  %v859_v10 = vrot.slane %v2552_v2, 1  ;;  %v2586_v39 = vld [vmem:[#allocation2 + $0x20] ss:$0 sps:$4 sm:$0x11]   ;;  %v2607_v60 = vld [vmem:[#allocation2 + $0x48] sm:$0xff]   ;;  %s1732_s12 = sadd.s32 %s1985_s10, %s1958_s8 }
  0x3b   : > { %v757_v11 = vrot.slane %v755_v3, 1  ;;  %v762_v12 = vrot.slane %v760_v4, 1  ;;  %v486_v15 = vshrl.u32 %v2542_v51, 16  ;;  %v488_v16 = vshll.u32 %v2542_v51, 16  ;;  %s1959_s18 = sshll.u32 %s1732_s12, 6 }
  0x3c   : > { %557 = vrot.lane.b32.xlu0 %v472_v5, %s2347_s6  ;;  %v751_v13 = vsel %vm460_vm3, %v746_v7, %v750_v1  ;;  %v493_v17 = vshll.u32 %v2207_v55, 16  ;;  %v474_v19 = vshrl.u32 %v2512_v24, 16  ;;  %v476_v20 = vshll.u32 %v2512_v24, 16  ;;  %v2598_v53 = vld [vmem:[#allocation2 + $0x44] ss:$0 sps:$4 sm:$0x11]   ;;  %s3012_s11 = scalar_lea.hbm %s3080_s4, %s1959_s18 }
  0x3d   : > { %878 = vrot.lane.b32.xlu1 %v857_v57, %s2346_s30  ;;  %v758_v18 = vor.u32 %v757_v11, %v753_v0  ;;  %v861_v21 = vrot.slane %v2558_v8, 1  ;;  %v862_v22 = vrot.slane %v2211_v14, 1  ;;  %v490_v23 = vrot.slane %v488_v16, 1 }
  0x3e   : > { %v481_v27 = vshll.u32 %v2514_v25, 16  ;;  %v860_v28 = vsel %vm573_vm2, %v858_v9, %v859_v10  ;;  %v495_v29 = vrot.slane %v493_v17, 1  ;;  %v478_v31 = vrot.slane %v476_v20, 1  ;;  %v2219_v20 = vld [vmem:[#allocation2 + $0x2c] ss:$0 sps:$4 sm:$0x11]  }
  0x3f   : > { %v500_v33 = vshll.u32 %v2520_v30, 16  ;;  %v763_v34 = vsel %vm460_vm3, %v758_v18, %v762_v12  ;;  %v491_v36 = vor.u32 %v490_v23, %v486_v15  ;;  %v498_v37 = vshrl.u32 %v2520_v30, 16  ;;  %v2619_v12 = vld [vmem:[#allocation2 + $0x24] sm:$0xff]  }
  0x40   : > { %836 = vrot.lane.b32.xlu0 %v751_v13, %s2347_s6  ;;  %v505_v25 = vshll.u32 %v2526_v35, 16  ;;  %v479_v40 = vor.u32 %v478_v31, %v474_v19  ;;  %v483_v41 = vrot.slane %v481_v27, 1  ;;  %v767_v44 = vshll.u32 %v2549_v63, 16  ;;  %v2593_v35 = vld [vmem:[#allocation2 + $0x3c] sm:$0xff]  }
  0x41   : > { %602 = vrot.lane.b32.xlu1 %v582_v6, %s2346_s30  ;;  %v502_v42 = vrot.slane %v500_v33, 1  ;;  %v863_v45 = vsel %vm573_vm2, %v861_v21, %v862_v22  ;;  %v765_v46 = vshrl.u32 %v2549_v63, 16  ;;  %v772_v47 = vshll.u32 %v2552_v2, 16  ;;  %v2616_v6 = vld [vmem:[#allocation2 + $0x50] ss:$0 sps:$4 sm:$0x11]  }
  0x42   : > { %v496_v48 = vsel %vm460_vm3, %v491_v36, %v495_v29  ;;  %v507_v49 = vrot.slane %v505_v25, 1  ;;  %v769_v50 = vrot.slane %v767_v44, 1  ;;  %v779_v52 = vshll.u32 %v2558_v8, 16  ;;  %v2633_v29 = vld [vmem:[#allocation2 + $0x30] sm:$0xff]  }
  0x43   : > { %v503_v54 = vor.u32 %v502_v42, %v498_v37  ;;  %v777_v55 = vshrl.u32 %v2558_v8, 16  ;;  %v784_v56 = vshll.u32 %v2211_v14, 16  ;;  %v1272_v57 = vshll.u32 %v2584_v38, 16  ;;  %v2645_v42 = vld [vmem:[#allocation2 + $0x54] sm:$0xff]  }
  0x44   : > { %838 = vrot.lane.b32.xlu0 %v763_v34, %s2347_s6  ;;  %v484_v58 = vsel %vm460_vm3, %v479_v40, %v483_v41  ;;  %v781_v59 = vrot.slane %v779_v52, 1  ;;  %v774_v61 = vrot.slane %v772_v47, 1  ;;  %v1270_v62 = vshrl.u32 %v2584_v38, 16 }
  0x45   : > { %880 = vrot.lane.b32.xlu1 %v860_v28, %s2346_s30  ;;  %v1277_v0 = vshll.u32 %v2586_v39, 16  ;;  %v791_v1 = vshll.u32 %v2593_v35, 16  ;;  %v770_v2 = vor.u32 %v769_v50, %v765_v46  ;;  %v1274_v3 = vrot.slane %v1272_v57, 1  ;;  %v359_v46 = vld [vmem:[%s2638_s14] sm:$0xf] }
  0x46   : > { %v789_v4 = vshrl.u32 %v2593_v35, 16  ;;  %v796_v5 = vshll.u32 %v2598_v53, 16  ;;  %v508_v7 = vsel %vm460_vm3, %v503_v54, %v507_v49  ;;  %v782_v9 = vor.u32 %v781_v59, %v777_v55  ;;  %v360_v49 = vld [vmem:[%s2638_s14 + $0x4] sm:$0xf]  ;;  %366 = vst.msk [vmem:[#allocation2 + $0x60] sm:$0xf] %vm333_vm0, %v359_v46 }
  0x47   : > { %v786_v10 = vrot.slane %v784_v56, 1  ;;  %v793_v11 = vrot.slane %v791_v1, 1  ;;  %v803_v13 = vshll.u32 %v2607_v60, 16  ;;  %v1279_v14 = vrot.slane %v1277_v0, 1  ;;  %367 = vst.msk [vmem:[#allocation2 + $0x64] sm:$0xf] %vm333_vm0, %v360_v49 }
  0x48   : > { %561 = vrot.lane.b32.xlu0 %v496_v48, %s2347_s6  ;;  %v798_v15 = vrot.slane %v796_v5, 1  ;;  %v775_v16 = vsel %vm460_vm3, %v770_v2, %v774_v61  ;;  %v1275_v17 = vor.u32 %v1274_v3, %v1270_v62  ;;  %v801_v19 = vshrl.u32 %v2607_v60, 16  ;;  %v2653_v48 = vld [vmem:[#allocation2 + $0x5c] ss:$0 sps:$4 sm:$0x11]  }
  0x49   : > { %882 = vrot.lane.b32.xlu1 %v863_v45, %s2346_s30  ;;  %v794_v18 = vor.u32 %v793_v11, %v789_v4  ;;  %v787_v21 = vsel %vm460_vm3, %v782_v9, %v786_v10  ;;  %v805_v22 = vrot.slane %v803_v13, 1  ;;  %v808_v23 = vshll.u32 %v2616_v6, 16  ;;  %v2648_v45 = vld [vmem:[#allocation2 + $0x38] ss:$0 sps:$4 sm:$0x11]   ;;  %v2674_v4 = vld [vmem:[#allocation2 + $0x3c] sm:$0xff]  }
  0x4a   : > { %v1284_v27 = vshll.u32 %v2619_v12, 16  ;;  %v864_v28 = vrot.slane %v2593_v35, 1  ;;  %v1280_v31 = vsel %vm460_vm3, %v1275_v17, %v1279_v14  ;;  %v865_v34 = vrot.slane %v2598_v53, 1  ;;  %v361_v53 = vld [vmem:[%s2638_s14 + $0x8] sm:$0x1] }
  0x4b   : > { %v799_v33 = vsel %vm460_vm3, %v794_v18, %v798_v15  ;;  %v1282_v36 = vshrl.u32 %v2619_v12, 16  ;;  %v806_v37 = vor.u32 %v805_v22, %v801_v19  ;;  %v810_v25 = vrot.slane %v808_v23, 1  ;;  %368 = vst.msk [vmem:[#allocation2 + $0x68] sm:$0x1] %vm336_vm1, %v361_v53 }
  0x4c   : > { %563 = vrot.lane.b32.xlu0 %v508_v7, %s2347_s6  ;;  %v1286_v40 = vrot.slane %v1284_v27, 1  ;;  %v1289_v41 = vshll.u32 %v2219_v20, 16  ;;  %v1381_v44 = vrot.slane %v2584_v38, 1  ;;  %v1382_v47 = vrot.slane %v2586_v39, 1 }
  0x4d   : > { %559 = vrot.lane.b32.xlu1 %v484_v58, %s2347_s6  ;;  %v866_v50 = vsel %vm573_vm2, %v864_v28, %v865_v34  ;;  %v1296_v52 = vshll.u32 %v2633_v29, 16  ;;  %v811_v54 = vsel %vm460_vm3, %v806_v37, %v810_v25  ;;  %v815_v39 = vshll.u32 %v2645_v42, 16  ;;  %v2699_v25 = vld [vmem:[#allocation2 + $0x30] sm:$0xff]  }
  0x4e   : > { %v1287_v55 = vor.u32 %v1286_v40, %v1282_v36  ;;  %v1291_v56 = vrot.slane %v1289_v41, 1  ;;  %v1384_v57 = vrot.slane %v2619_v12, 1  ;;  %v1385_v58 = vrot.slane %v2219_v20, 1  ;;  %v2679_v11 = vld [vmem:[#allocation2 + $0x60] sm:$0xff]  }
  0x4f   : > { %v1383_v59 = vsel %vm573_vm2, %v1381_v44, %v1382_v47  ;;  %v867_v61 = vrot.slane %v2607_v60, 1  ;;  %v1301_v62 = vshll.u32 %v2648_v45, 16  ;;  %v868_v0 = vrot.slane %v2616_v6, 1  ;;  %v2703_v49 = vld [vmem:[#allocation2 + $0x50] ss:$0 sps:$4 sm:$0x11]  }
  0x50   : > { %842 = vrot.lane.b32.xlu0 %v787_v21, %s2347_s6  ;;  %v1294_v1 = vshrl.u32 %v2633_v29, 16  ;;  %v1298_v2 = vrot.slane %v1296_v52, 1  ;;  %v813_v3 = vshrl.u32 %v2645_v42, 16  ;;  %v1292_v5 = vsel %vm460_vm3, %v1287_v55, %v1291_v56  ;;  %v2227_v21 = vld [vmem:[#allocation2 + $0x44] ss:$0 sps:$4 sm:$0x11]  }
  0x51   : > { %840 = vrot.lane.b32.xlu1 %v775_v16, %s2347_s6  ;;  %v817_v7 = vrot.slane %v815_v39, 1  ;;  %v820_v9 = vshll.u32 %v2653_v48, 16  ;;  %v1303_v10 = vrot.slane %v1301_v62, 1  ;;  %v1386_v6 = vsel %vm573_vm2, %v1384_v57, %v1385_v58  ;;  %v2713_v56 = vld [vmem:[#allocation2 + $0x38] ss:$0 sps:$4 sm:$0x11]  }
  0x52   : > { %v869_v13 = vsel %vm573_vm2, %v867_v61, %v868_v0  ;;  %v1299_v14 = vor.u32 %v1298_v2, %v1294_v1  ;;  %v2684_v15 = vld [vmem:[#allocation2 + $0x68] ss:$0 sps:$4 sm:$0x11]   ;;  %v1308_v16 = vshll.u32 %v2674_v4, 16  ;;  %v825_v19 = vshrl.u32 %v2679_v11, 16  ;;  %v2244_v1 = vld [vmem:[%s3078_s2 + $0xc] sm:$0xff]  }
  0x53   : > { %v818_v17 = vor.u32 %v817_v7, %v813_v3  ;;  %v822_v18 = vrot.slane %v820_v9, 1  ;;  %v827_v20 = vshll.u32 %v2679_v11, 16  ;;  %v832_v22 = vshll.u32 %v2684_v15, 16  ;;  %v2719_v62 = vld [vmem:[#allocation2 + $0x44] ss:$0 sps:$4 sm:$0x11]   ;;  %2018 = vmatprep.subr.bf16.mxu1 %v2244_v1 }
  0x54   : > { %844 = vrot.lane.b32.xlu0 %v799_v33, %s2347_s6  ;;  %v870_v23 = vrot.slane %v2645_v42, 1  ;;  %v1387_v28 = vrot.slane %v2633_v29, 1  ;;  %v1304_v33 = vsel %vm460_vm3, %v1299_v14, %v1303_v10  ;;  %v871_v34 = vrot.slane %v2653_v48, 1  ;;  %v2732_v9 = vld [vmem:[%s3078_s2] sm:$0xff]   ;;  %v2737_v14 = vld [vmem:[#allocation2 + $0x54] sm:$0xff]   ;;  %2019 = vmatpush3.bf16.msra.mxu1 %v2244_v1 }
  0x55   : > { %1365 = vrot.lane.b32.xlu1 %v1280_v31, %s2347_s6  ;;  %v829_v27 = vrot.slane %v827_v20, 1  ;;  %v2693_v31 = vld [vmem:[#allocation2 + $0x48] sm:$0xff]   ;;  %v1306_v36 = vshrl.u32 %v2674_v4, 16  ;;  %v1310_v37 = vrot.slane %v1308_v16, 1  ;;  %v823_v40 = vsel %vm460_vm3, %v818_v17, %v822_v18  ;;  %2038 = vmatprep.subr.bf16.mxu0 %v2732_v9 }
  0x56   : > { %v834_v44 = vrot.slane %v832_v22, 1  ;;  %v1313_v46 = vshll.u32 %v2227_v21, 16  ;;  %v1388_v47 = vrot.slane %v2648_v45, 1  ;;  %v1391_v52 = vrot.slane %v2227_v21, 1  ;;  %2039 = vmatpush3.bf16.msra.mxu0 %v2732_v9 }
  0x57   : > { %v830_v41 = vor.u32 %v829_v27, %v825_v19  ;;  %v1318_v48 = vshrl.u32 %v2693_v31, 16  ;;  %v1320_v53 = vshll.u32 %v2693_v31, 16  ;;  %v872_v55 = vsel %vm573_vm2, %v870_v23, %v871_v34  ;;  %v2746_v23 = vld [vmem:[#allocation2 + $0x5c] ss:$0 sps:$4 sm:$0x11]  }
  0x58   : > { %846 = vrot.lane.b32.xlu0 %v811_v54, %s2347_s6  ;;  %v2709_v54 = vld [vmem:[#allocation2 + $0x3c] sm:$0xff]   ;;  %v512_v45 = vshll.u32 %v2699_v25, 16  ;;  %v1311_v57 = vor.u32 %v1310_v37, %v1306_v36  ;;  %v1315_v58 = vrot.slane %v1313_v46, 1  ;;  %v1325_v61 = vshll.u32 %v2703_v49, 16  ;;  %v363_v34 = vld [vmem:[%s2638_s14 + $0x10] sm:$0xf] }
  0x59   : > { %884 = vrot.lane.b32.xlu1 %v866_v50, %s2346_s30  ;;  %v1390_v50 = vrot.slane %v2674_v4, 1  ;;  %v835_v39 = vsel %vm460_vm3, %v830_v41, %v834_v44  ;;  %v1322_v0 = vrot.slane %v1320_v53, 1  ;;  %v1389_v2 = vsel %vm573_vm2, %v1387_v28, %v1388_v47  ;;  %v364_v36 = vld [vmem:[%s2638_s14 + $0x14] sm:$0x1]  ;;  %370 = vst.msk [vmem:[#allocation2 + $0x70] sm:$0xf] %vm333_vm0, %v363_v34 }
  0x5a   : > { %v514_v3 = vrot.slane %v512_v45, 1  ;;  %v524_v7 = vshll.u32 %v2709_v54, 16  ;;  %v1316_v10 = vsel %vm460_vm3, %v1311_v57, %v1315_v58  ;;  %v1327_v18 = vrot.slane %v1325_v61, 1  ;;  %v2245_v37 = vld [vmem:[%s3078_s2 + $0x14] ss:$0 sps:$4 sm:$0xff]  }
  0x5b   : > { %v1392_v16 = vsel %vm573_vm2, %v1390_v50, %v1391_v52  ;;  %v1323_v17 = vor.u32 %v1322_v0, %v1318_v48  ;;  %v522_v19 = vshrl.u32 %v2709_v54, 16  ;;  %v529_v22 = vshll.u32 %v2719_v62, 16  ;;  %371 = vst.msk [vmem:[#allocation2 + $0x74] sm:$0x1] %vm336_vm1, %v364_v36  ;;  %v2767_v47 = vld [vmem:[%s3078_s2 + $0x8] ss:$0 sps:$4 sm:$0xff]   ;;  %2114 = vmatprep.subr.msk.bf16.mxu1 %vm954_vm4, %v2245_v37 }
  0x5c   : > { %1367 = vrot.lane.b32.xlu0 %v1292_v5, %s2347_s6  ;;  %v517_v5 = vshll.u32 %v2713_v56, 16  ;;  %v526_v21 = vrot.slane %v524_v7, 1  ;;  %v1332_v28 = vshll.u32 %v2737_v14, 16  ;;  %v586_v41 = vrot.slane %v2699_v25, 1  ;;  %v2772_v50 = vld [vmem:[%s3078_s2 + $0x18] sm:$0xff]   ;;  %2115 = vmatprep.subr.msk.bf16.mxu0 %vm954_vm4, %v2767_v47 }
  0x5d   : > { %1405 = vrot.lane.b32.xlu1 %v1383_v59, %s2346_s30  ;;  %v510_v59 = vshrl.u32 %v2699_v25, 16  ;;  %v587_v44 = vrot.slane %v2713_v56, 1  ;;  %v1330_v46 = vshrl.u32 %v2737_v14, 16  ;;  %v531_v53 = vrot.slane %v529_v22, 1  ;;  %v2778_v56 = vld [vmem:[#allocation2 + $0x48] sm:$0xff]   ;;  %v2800_v7 = vld [vmem:[#allocation2 + $0x54] sm:$0xff]  }
  0x5e   : > { %v519_v20 = vrot.slane %v517_v5, 1  ;;  %v527_v48 = vor.u32 %v526_v21, %v522_v19  ;;  %v1334_v45 = vrot.slane %v1332_v28, 1  ;;  %v956_v57 = vsel %vm954_vm4, %v2245_v37, 0  ;;  %v2793_v0 = vld [vmem:[#allocation2 + $0x68] ss:$0 sps:$4 sm:$0x11]  }
  0x5f   : > { %v2787_v58 = vsel %vm954_vm4, %v2767_v47, 0  ;;  %v1394_v61 = vrot.slane %v2703_v49, 1  ;;  %2021 = vmatpush3.bf16.msra.mxu1 %v956_v57  ;;  %v588_v1 = vsel %vm573_vm2, %v586_v41, %v587_v44  ;;  %v536_v5 = vshll.u32 %v2778_v56, 16 }
  0x60   : > { %886 = vrot.lane.b32.xlu0 %v869_v13, %s2346_s30  ;;  %v874_v13 = vrot.slane %v2684_v15, 1  ;;  %v515_v15 = vor.u32 %v514_v3, %v510_v59  ;;  %v1393_v59 = vrot.slane %v2693_v31, 1  ;;  %2041 = vmatpush3.bf16.msra.mxu0 %v2787_v58  ;;  %v2239_v3 = vld [vmem:[#allocation2 + $0x50] ss:$0 sps:$4 sm:$0x11]   ;;  %v532_v49 = vsel %vm460_vm3, %v527_v48, %v531_v53 }
  0x61   : > { %1407 = vrot.lane.b32.xlu1 %v1386_v6, %s2346_s30  ;;  %v873_v6 = vrot.slane %v2679_v11, 1  ;;  %2058 = vmatprep.subr.bf16.mxu0 %v2772_v50  ;;  %v1349_v19 = vshll.u32 %v2793_v0, 16  ;;  %v538_v21 = vrot.slane %v536_v5, 1  ;;  %v541_v22 = vshll.u32 %v2239_v3, 16 }
  0x62   : > { %v520_v52 = vsel %vm460_vm3, %v515_v15, %v519_v20  ;;  %2078 = vmatprep.subr.bf16.mxu1 %v2732_v9  ;;  %v534_v15 = vshrl.u32 %v2778_v56, 16  ;;  %v590_v34 = vrot.slane %v2719_v62, 1  ;;  %v546_v41 = vshrl.u32 %v2800_v7, 16  ;;  %v2243_v62 = vld [vmem:[#allocation2 + $0x74] ss:$0 sps:$4 sm:$0x11]  }
  0x63   : > { %v875_v27 = vsel %vm573_vm2, %v873_v6, %v874_v13  ;;  %v1395_v13 = vsel %vm573_vm2, %v1393_v59, %v1394_v61  ;;  %v592_v57 = vrot.slane %v2778_v56, 1 }
  0x64   : > { %848 = vrot.lane.b32.xlu0 %v823_v40, %s2347_s6  ;;  %v1328_v40 = vsel %vm460_vm3, %v1323_v17, %v1327_v18  ;;  %v1397_v17 = vrot.slane %v2746_v23, 1 }
  0x65   : > { %1369 = vrot.lane.b32.xlu1 %v1304_v33, %s2347_s6  ;;  %v362_v33 = vld [vmem:[%s2638_s14 + $0xc] sm:$0xf]  ;;  %s268_s14 = sand.u32 1, %s2320_s16  }
  0x66   : > { %369 = vst.msk [vmem:[#allocation2 + $0x6c] sm:$0xf] %vm333_vm0, %v362_v33  ;;  %v589_v33 = vrot.slane %v2709_v54, 1  ;;  %s1848_s27 = sshll.u32 %s268_s14, 6 }
  0x67   : > { %s2966_s5 = scalar_lea.vmem [#allocation3], %s1848_s27  ;;  %s2256_s27 = scalar_lea.vmem %s2255_s24, 2048 }
  0x68   : > { %850 = vrot.lane.b32.xlu0 %v835_v39, %s2347_s6  ;;  %v1337_v39 = vshll.u32 %v2746_v23, 16  ;;  %v2241_v23 = vld [vmem:[#allocation2 + $0x5c] ss:$0 sps:$4 sm:$0x11]   ;;  %v591_v53 = vsel %vm573_vm2, %v589_v33, %v590_v34  ;;  %s1735_s19 = sshll.u32 %s2966_s5, 4  ;;  %s3014_s19 = int_to_ptr.vmem [resolvable:$true] %s1735_s19 }
  0x69   : > { %888 = vrot.lane.b32.xlu1 %v872_v55, %s2346_s30  ;;  %v2776_v55 = vld [vmem:[#allocation2 + $0x60] sm:$0xff]   ;;  %p2257_p5 = scmp.lt.s32.totalorder %s3014_s19, %s2255_s24 }
  0x6a   : > { %v1339_v6 = vrot.slane %v1337_v39, 1  ;;  %v1342_v18 = vshrl.u32 %v2776_v55, 16 }
  0x6c   : > { %1371 = vrot.lane.b32.xlu0 %v1316_v10, %s2347_s6  ;;  %v1335_v10 = vor.u32 %v1334_v45, %v1330_v46  ;;  %v539_v46 = vor.u32 %v538_v21, %v534_v15  ;;  %v553_v45 = vshll.u32 %v2241_v23, 16  ;;  %v1403_v21 = vrot.slane %v2243_v62, 1 }
  0x6d   : > { %1409 = vrot.lane.b32.xlu1 %v1389_v2, %s2346_s30  ;;  %v1344_v2 = vshll.u32 %v2776_v55, 16  ;;  %v2816_v36 = vld [vmem:[#allocation2 + $0x6c] sm:$0xff]  }
  0x6e   : > { %v1340_v28 = vsel %vm460_vm3, %v1335_v10, %v1339_v6  ;;  %v1356_v39 = vshll.u32 %v2816_v36, 16  ;;  %v555_v5 = vrot.slane %v553_v45, 1  ;;  %v1361_v6 = vshll.u32 %v2243_v62, 16 }
  0x6f   : > { %v1346_v20 = vrot.slane %v1344_v2, 1 }
  0x70   : > { %890 = vrot.lane.b32.xlu0 %v875_v27, %s2346_s30  ;;  %v548_v27 = vshll.u32 %v2800_v7, 16  ;;  %v1358_v10 = vrot.slane %v1356_v39, 1 }
  0x71   : > { %1411 = vrot.lane.b32.xlu1 %v1392_v16, %s2346_s30  ;;  %v1396_v16 = vrot.slane %v2737_v14, 1  ;;  %v1347_v44 = vor.u32 %v1346_v20, %v1342_v18  ;;  %v1402_v20 = vrot.slane %v2816_v36, 1 }
  0x72   : > { %v550_v48 = vrot.slane %v548_v27, 1  ;;  %v595_v27 = vrot.slane %v2800_v7, 1 }
  0x73   : > { %v1398_v37 = vsel %vm573_vm2, %v1396_v16, %v1397_v17  ;;  %v1399_v16 = vrot.slane %v2776_v55, 1  ;;  %v1400_v17 = vrot.slane %v2793_v0, 1  ;;  %v1404_v0 = vsel %vm573_vm2, %v1402_v20, %v1403_v21 }
  0x74   : > { %565 = vrot.lane.b32.xlu0 %v520_v52, %s2347_s6  ;;  %v543_v52 = vrot.slane %v541_v22, 1  ;;  %v551_v2 = vor.u32 %v550_v48, %v546_v41 }
  0x75   : > { %1373 = vrot.lane.b32.xlu1 %v1328_v40, %s2347_s6  ;;  %v1351_v40 = vrot.slane %v1349_v19, 1  ;;  %v1401_v15 = vsel %vm573_vm2, %v1399_v16, %v1400_v17 }
  0x76   : > { %v544_v61 = vsel %vm460_vm3, %v539_v46, %v543_v52  ;;  %v556_v18 = vsel %vm460_vm3, %v551_v2, %v555_v5 }
  0x77   : > { %v1352_v59 = vsel %vm460_vm3, %v1347_v44, %v1351_v40 }
  0x78   : > { %567 = vrot.lane.b32.xlu0 %v532_v49, %s2347_s6  ;;  %v1354_v49 = vshrl.u32 %v2816_v36, 16 }
  0x79   : > { %606 = vrot.lane.b32.xlu1 %v588_v1, %s2346_s30  ;;  %v593_v1 = vrot.slane %v2239_v3, 1  ;;  %v1363_v3 = vrot.slane %v1361_v6, 1 }
  0x7a   : > { %v1359_v19 = vor.u32 %v1358_v10, %v1354_v49 }
  0x7c   : > { %1375 = vrot.lane.b32.xlu0 %v1340_v28, %s2347_s6  ;;  %v1364_v22 = vsel %vm460_vm3, %v1359_v19, %v1363_v3  ;;  %v596_v28 = vrot.slane %v2241_v23, 1 }
  0x7d   : > { %1413 = vrot.lane.b32.xlu1 %v1395_v13, %s2346_s30  ;;  %v594_v13 = vsel %vm573_vm2, %v592_v57, %v593_v1 }
  0x7e   : > { %v597_v33 = vsel %vm573_vm2, %v595_v27, %v596_v28 }
  0x80   : > { %608 = vrot.lane.b32.xlu0 %v591_v53, %s2346_s30 }
  0x81   : > { %1415 = vrot.lane.b32.xlu1 %v1398_v37, %s2346_s30 }
  0x84   : > { %569 = vrot.lane.b32.xlu0 %v544_v61, %s2347_s6 }
  0x85   : > { %1377 = vrot.lane.b32.xlu1 %v1352_v59, %s2347_s6 }
  0x88   : > { %571 = vrot.lane.b32.xlu0 %v556_v18, %s2347_s6 }
  0x89   : > { %610 = vrot.lane.b32.xlu1 %v594_v13, %s2346_s30 }
  0x8c   : > { %1379 = vrot.lane.b32.xlu0 %v1364_v22, %s2347_s6  ;;  %s2250_s6 = scalar_lea.vmem %s3014_s19, 1024 }
  0x8d   : > { %1417 = vrot.lane.b32.xlu1 %v1401_v15, %s2346_s30  ;;  %p2251_p1 = scmp.ne.s32.totalorder %s3014_s19, %s2250_s6  ;;  %p2258_p6 = scmp.lt.s32.totalorder %s2256_s27, %s2250_s6 }
  0x8f   : > { %p2252_p2 = pnand %p2251_p1, %p2427_p3  ;;  %p2259_p7 = por %p2258_p6, %p2257_p5 }
  0x90   : > { %612 = vrot.lane.b32.xlu0 %v597_v33, %s2346_s30 }
  0x91   : > { %1419 = vrot.lane.b32.xlu1 %v1404_v0, %s2346_s30  ;;  %s3024_s30 = scalar_lea.sflag [#allocation4], %s268_s14  ;;  %p2253_p4 = pneg %p2252_p2 }
  0x93   : > { %p2260_p9 = pnand %p2259_p7, %p2253_p4 }
  0xa6   : > { %v601_v34 = vpop.permute.xlu0 %600 }
  0xa7   : > { %v599_v37 = vpop.permute.xlu1 %598 }
  0xaa   : > { %v605_v40 = vpop.permute.xlu0 %604 }
  0xab   : > { %v877_v41 = vpop.permute.xlu1 %876 }
  0xae   : > { %v558_v23 = vpop.permute.xlu0 %557 }
  0xaf   : > { %v879_v44 = vpop.permute.xlu1 %878  ;;  %v616_v46 = vsel %vm614_vm5, %v2516_v26, %v558_v23 }
  0xb0   : > { %v633_v52 = vsel %vm631_vm6, %v616_v46, %v599_v37 }
  0xb1   : > { %2042 = vmatprep.mubr.msk.bf16.mxu0 %vm937_vm7, %v633_v52 }
  0xb2   : > { %v837_v53 = vpop.permute.xlu0 %836 }
  0xb3   : > { %v603_v48 = vpop.permute.xlu1 %602  ;;  %v893_v45 = vsel %vm614_vm5, %v2523_v32, %v837_v53 }
  0xb4   : > { %v909_v62 = vsel %vm631_vm6, %v893_v45, %v877_v41 }
  0xb5   : > { %2022 = vmatprep.mubr.msk.bf16.mxu1 %vm937_vm7, %v909_v62 }
  0xb6   : > { %v839_v57 = vpop.permute.xlu0 %838 }
  0xb7   : > { %v881_v39 = vpop.permute.xlu1 %880  ;;  %v895_v59 = vsel %vm614_vm5, %v2535_v43, %v839_v57  ;;  %v2249_v43 = vld [vmem:[%s3078_s2 + $0x20] ss:$0 sps:$4 sm:$0xff]  }
  0xb8   : > { %v911_v26 = vsel %vm631_vm6, %v895_v59, %v879_v44  ;;  %v1483_v6 = vsel %vm954_vm4, %v2249_v43, 0 }
  0xb9   : > { %2023 = vmatmul.mubr.msk.bf16.vlgmr.msra.gmra.mrb[0].mxu1 %vm937_vm7, %v911_v26 }
  0xba   : > { %v562_v1 = vpop.permute.xlu0 %561  ;;  %2080 = vmatpush3.bf16.msra.mxu1 %v2732_v9 }
  0xbb   : > { %v883_v61 = vpop.permute.xlu1 %882  ;;  %2116 = vmatprep.subr.msk.bf16.mxu1 %vm954_vm4, %v2767_v47  ;;  %v620_v32 = vsel %vm614_vm5, %v2542_v51, %v562_v1 }
  0xbc   : > { %v637_v9 = vsel %vm631_vm6, %v620_v32, %v603_v48 }
  0xbe   : > { %v564_v49 = vpop.permute.xlu0 %563  ;;  %2081 = vmatpush3.bf16.msra.mxu1 %v2787_v58 }
  0xbf   : > { %v560_v2 = vpop.permute.xlu1 %559  ;;  %v622_v16 = vsel %vm614_vm5, %v2520_v30, %v564_v49 }
  0xc0   : > { %v618_v5 = vsel %vm614_vm5, %v2512_v24, %v560_v2  ;;  %v639_v18 = vsel %vm631_vm6, %v622_v16, %v605_v40 }
  0xc1   : > { %v635_v10 = vsel %vm631_vm6, %v618_v5, %v601_v34 }
  0xc2   : > { %2043 = vmatmul.mubr.msk.bf16.vlgmr.msra.gmra.mrb[0].mxu0 %vm937_vm7, %v635_v10  ;;  %v843_v51 = vpop.permute.xlu0 %842 }
  0xc3   : > { %v841_v47 = vpop.permute.xlu1 %840  ;;  %2046 = vmatprep.mubr.msk.bf16.mxu0 %vm937_vm7, %v637_v9  ;;  %2059 = vmatpush3.bf16.msra.mxu0 %v2772_v50  ;;  %v899_v58 = vsel %vm614_vm5, %v2558_v8, %v843_v51 }
  0xc4   : > { %v897_v24 = vsel %vm614_vm5, %v2549_v63, %v841_v47  ;;  %2117 = vmatprep.subr.msk.bf16.mxu0 %vm954_vm4, %v2249_v43  ;;  %v915_v50 = vsel %vm631_vm6, %v899_v58, %v883_v61 }
  0xc5   : > { %v913_v13 = vsel %vm631_vm6, %v897_v24, %v881_v39 }
  0xc6   : > { %2026 = vmatprep.mubr.msk.bf16.mxu1 %vm937_vm7, %v913_v13  ;;  %v845_v63 = vpop.permute.xlu0 %844 }
  0xc7   : > { %v1366_v17 = vpop.permute.xlu1 %1365  ;;  %2027 = vmatmul.mubr.msk.bf16.gmra.mrb[4].mxu1 %vm937_vm7, %v915_v50  ;;  %2061 = vmatpush3.bf16.msra.mxu0 %v1483_v6  ;;  %v901_v8 = vsel %vm614_vm5, %v2593_v35, %v845_v63 }
  0xc8   : > { %v1422_v15 = vsel %vm614_vm5, %v2584_v38, %v1366_v17 }
  0xca   : > { %2047 = vmatmul.mubr.msk.bf16.gmra.mrb[4].mxu0 %vm937_vm7, %v639_v18  ;;  %v847_v30 = vpop.permute.xlu0 %846 }
  0xcb   : > { %v885_v19 = vpop.permute.xlu1 %884  ;;  %v903_v35 = vsel %vm614_vm5, %v2607_v60, %v847_v30 }
  0xcc   : > { %v917_v3 = vsel %vm631_vm6, %v901_v8, %v885_v19 }
  0xcd   : > { %2030 = vmatprep.mubr.msk.bf16.mxu1 %vm937_vm7, %v917_v3 }
  0xce   : > { %v1368_v22 = vpop.permute.xlu0 %1367 }
  0xcf   : > { %v1406_v20 = vpop.permute.xlu1 %1405  ;;  %v1424_v27 = vsel %vm614_vm5, %v2619_v12, %v1368_v22  ;;  %v2958_v22 = vld [vmem:[%s3079_s3] ss:$0 sm:$0xff] }
  0xd0   : > { %v1438_v21 = vsel %vm631_vm6, %v1422_v15, %v1406_v20 }
  0xd1   : > { %2062 = vmatprep.mubr.msk.bf16.mxu0 %vm937_vm7, %v1438_v21 }
  0xd2   : > { %v887_v33 = vpop.permute.xlu0 %886 }
  0xd3   : > { %v1408_v28 = vpop.permute.xlu1 %1407  ;;  %v919_v34 = vsel %vm631_vm6, %v903_v35, %v887_v33 }
  0xd4   : > { %v1440_v0 = vsel %vm631_vm6, %v1424_v27, %v1408_v28  ;;  %2031 = vmatmul.mubr.msk.bf16.gmra.mrb[8].mxu1 %vm937_vm7, %v919_v34 }
  0xd5   : > { %2063 = vmatmul.mubr.msk.bf16.vlgmr.msra.gmra.mrb[0].mxu0 %vm937_vm7, %v1440_v0 }
  0xd6   : > { %v849_v37 = vpop.permute.xlu0 %848 }
  0xd7   : > { %v1370_v38 = vpop.permute.xlu1 %1369  ;;  %v905_v40 = vsel %vm614_vm5, %v2645_v42, %v849_v37 }
  0xd8   : > { %v1426_v60 = vsel %vm614_vm5, %v2633_v29, %v1370_v38 }
  0xda   : > { %v851_v44 = vpop.permute.xlu0 %850 }
  0xdb   : > { %v889_v41 = vpop.permute.xlu1 %888  ;;  %v907_v42 = vsel %vm614_vm5, %v2679_v11, %v851_v44 }
  0xdc   : > { %v921_v12 = vsel %vm631_vm6, %v905_v40, %v889_v41 }
  0xdd   : > { %2034 = vmatprep.mubr.msk.bf16.mxu1 %vm937_vm7, %v921_v12 }
  0xde   : > { %v1372_v52 = vpop.permute.xlu0 %1371 }
  0xdf   : > { %v1410_v23 = vpop.permute.xlu1 %1409  ;;  %v1428_v48 = vsel %vm614_vm5, %v2674_v4, %v1372_v52 }
  0xe0   : > { %v1442_v46 = vsel %vm631_vm6, %v1426_v60, %v1410_v23 }
  0xe1   : > { %2066 = vmatprep.mubr.msk.bf16.mxu0 %vm937_vm7, %v1442_v46 }
  0xe2   : > { %v891_v62 = vpop.permute.xlu0 %890 }
  0xe3   : > { %v1412_v53 = vpop.permute.xlu1 %1411  ;;  %v923_v39 = vsel %vm631_vm6, %v907_v42, %v891_v62 }
  0xe4   : > { %v1444_v45 = vsel %vm631_vm6, %v1428_v48, %v1412_v53  ;;  %2035 = vmatmul.mubr.msk.bf16.gmra.mrb[12].mxu1 %vm937_vm7, %v923_v39 }
  0xe5   : > { %2067 = vmatmul.mubr.msk.bf16.gmra.mrb[4].mxu0 %vm937_vm7, %v1444_v45 }
  0xe6   : > { %v566_v57 = vpop.permute.xlu0 %565 }
  0xe7   : > { %v1374_v29 = vpop.permute.xlu1 %1373  ;;  %v624_v59 = vsel %vm614_vm5, %v2699_v25, %v566_v57 }
  0xe8   : > { %v1430_v11 = vsel %vm614_vm5, %v2693_v31, %v1374_v29 }
  0xea   : > { %v568_v61 = vpop.permute.xlu0 %567 }
  0xeb   : > { %v607_v26 = vpop.permute.xlu1 %606  ;;  %v626_v25 = vsel %vm614_vm5, %v2709_v54, %v568_v61 }
  0xec   : > { %v641_v4 = vsel %vm631_vm6, %v624_v59, %v607_v26 }
  0xed   : > { %2050 = vmatprep.mubr.msk.bf16.mxu1 %vm937_vm7, %v641_v4 }
  0xee   : > { %v1376_v2 = vpop.permute.xlu0 %1375 }
  0xef   : > { %v1414_v1 = vpop.permute.xlu1 %1413  ;;  %v1432_v5 = vsel %vm614_vm5, %v2737_v14, %v1376_v2 }
  0xf0   : > { %v1446_v32 = vsel %vm631_vm6, %v1430_v11, %v1414_v1 }
  0xf1   : > { %2070 = vmatprep.mubr.msk.bf16.mxu0 %vm937_vm7, %v1446_v32 }
  0xf2   : > { %v609_v10 = vpop.permute.xlu0 %608 }
  0xf3   : > { %v1416_v49 = vpop.permute.xlu1 %1415  ;;  %v643_v9 = vsel %vm631_vm6, %v626_v25, %v609_v10 }
  0xf4   : > { %v1448_v43 = vsel %vm631_vm6, %v1432_v5, %v1416_v49  ;;  %2051 = vmatmul.mubr.msk.bf16.vlgmr.msra.gmra.mrb[8].mxu1 %vm937_vm7, %v643_v9 }
  0xf5   : > { %2071 = vmatmul.mubr.msk.bf16.gmra.mrb[8].mxu0 %vm937_vm7, %v1448_v43 }
  0xf6   : > { %v570_v47 = vpop.permute.xlu0 %569 }
  0xf7   : > { %v1378_v31 = vpop.permute.xlu1 %1377  ;;  %v628_v24 = vsel %vm614_vm5, %v2778_v56, %v570_v47 }
  0xf8   : > { %v1434_v54 = vsel %vm614_vm5, %v2776_v55, %v1378_v31 }
  0xfa   : > { %v572_v6 = vpop.permute.xlu0 %571 }
  0xfb   : > { %v611_v51 = vpop.permute.xlu1 %610  ;;  %v630_v17 = vsel %vm614_vm5, %v2800_v7, %v572_v6 }
  0xfc   : > { %v645_v14 = vsel %vm631_vm6, %v628_v24, %v611_v51 }
  0xfd   : > { %2054 = vmatprep.mubr.msk.bf16.mxu1 %vm937_vm7, %v645_v14 }
  0xfe   : > { %v1380_v16 = vpop.permute.xlu0 %1379 }
  0xff   : > { %v1418_v58 = vpop.permute.xlu1 %1417  ;;  %v1436_v50 = vsel %vm614_vm5, %v2816_v36, %v1380_v16 }
 0x100   : > { %v1450_v13 = vsel %vm631_vm6, %v1434_v54, %v1418_v58 }
 0x101   : > { %2074 = vmatprep.mubr.msk.bf16.mxu0 %vm937_vm7, %v1450_v13 }
 0x102   : > { %v613_v18 = vpop.permute.xlu0 %612 }
 0x103   : > { %v1420_v56 = vpop.permute.xlu1 %1419  ;;  %v647_v8 = vsel %vm631_vm6, %v630_v17, %v613_v18 }
 0x104   : > { %v1452_v63 = vsel %vm631_vm6, %v1436_v50, %v1420_v56  ;;  %2055 = vmatmul.mubr.msk.bf16.gmra.mrb[12].mxu1 %vm937_vm7, %v647_v8 }
 0x105   : > { %2075 = vmatmul.mubr.msk.bf16.gmra.mrb[12].mxu0 %vm937_vm7, %v1452_v63 }
 0x18c   : > { %v2024_v55 = vpop.f32.mrb[0].mxu1 }
 0x18d   : > { %v992_v19 = vpop.f32.mrb[1].mxu1 }
 0x18e   : > { %v2025_v3 = vpop.f32.mrb[2].mxu1 }
 0x18f   : > { %v995_v30 = vpop.f32.mrb[3].mxu1 }
 0x19a   : > { %v2028_v36 = vpop.f32.mrb[4].mxu1 }
 0x19b   : > { %v1008_v15 = vpop.f32.mrb[5].mxu1 }
 0x19c   : > { %v2029_v20 = vpop.f32.mrb[6].mxu1 }
 0x19d   : > { %v1011_v21 = vpop.f32.mrb[7].mxu1 }
 0x1a8   : > { %v2064_v7 = vpop.f32.mrb[0].mxu0 }
 0x1a9   : > { %v2082_v27 = vadd.f32 %v2064_v7, %v2024_v55  ;;  %v1519_v28 = vpop.f32.mrb[1].mxu0 }
 0x1aa   : > { %v2083_v35 = vadd.f32 %v1519_v28, %v992_v19  ;;  %v2065_v0 = vpop.f32.mrb[2].mxu0 }
 0x1ab   : > { %v1607_v33 = vadd.f32 %v2082_v27, %v2958_v22  ;;  %v2084_v34 = vadd.f32 %v2065_v0, %v2025_v3  ;;  %v1522_v38 = vpop.f32.mrb[3].mxu0 }
 0x1ac   : > { %v1605_v37 = vadd.f32 %v2083_v35, %v2958_v22  ;;  %v2085_v40 = vadd.f32 %v1522_v38, %v995_v30 }
 0x1ad   : > { %v1623_v41 = vmax.f32 %v1607_v33, 0.0  ;;  %v1608_v12 = vadd.f32 %v2084_v34, %v2958_v22 }
 0x1ae   : > { %v1621_v44 = vmax.f32 %v1605_v37, 0.0  ;;  %v1606_v60 = vadd.f32 %v2085_v40, %v2958_v22 }
 0x1af   : > { %v1971_v23 = vpack.c.bf16 %v1623_v41, %v1623_v41  ;;  %v1624_v46 = vmax.f32 %v1608_v12, 0.0 }
 0x1b0   : > { %v1969_v52 = vpack.c.bf16 %v1621_v44, %v1621_v44  ;;  %v1622_v48 = vmax.f32 %v1606_v60, 0.0 }
 0x1b1   : > { %1704 = vst.msk [vmem:[%s2966_s5 + $0x8] sm:$0xf] %vm1701_vm8, %v1971_v23  ;;  %v1972_v53 = vpack.c.bf16 %v1624_v46, %v1624_v46 }
 0x1b2   : > { %1702 = vst.msk [vmem:[%s2966_s5] sm:$0xf] %vm1701_vm8, %v1969_v52  ;;  %v1970_v42 = vpack.c.bf16 %v1622_v48, %v1622_v48 }
 0x1b3   : > { %1705 = vst.msk [vmem:[%s2966_s5 + $0xc] sm:$0xf] %vm1701_vm8, %v1972_v53 }
 0x1b4   : > { %1703 = vst.msk [vmem:[%s2966_s5 + $0x4] sm:$0xf] %vm1701_vm8, %v1970_v42 }
 0x1b8   : > { %v2068_v45 = vpop.f32.mrb[4].mxu0 }
 0x1b9   : > { %v2086_v62 = vadd.f32 %v2068_v45, %v2028_v36  ;;  %v1535_v39 = vpop.f32.mrb[5].mxu0 }
 0x1ba   : > { %v2087_v29 = vadd.f32 %v1535_v39, %v1008_v15  ;;  %v2069_v57 = vpop.f32.mrb[6].mxu0 }
 0x1bb   : > { %v1611_v59 = vadd.f32 %v2086_v62, %v2958_v22  ;;  %v2088_v26 = vadd.f32 %v2069_v57, %v2029_v20  ;;  %v1538_v4 = vpop.f32.mrb[7].mxu0 }
 0x1bc   : > { %v1609_v61 = vadd.f32 %v2087_v29, %v2958_v22  ;;  %v2089_v11 = vadd.f32 %v1538_v4, %v1011_v21 }
 0x1bd   : > { %v1627_v1 = vmax.f32 %v1611_v59, 0.0  ;;  %v1612_v32 = vadd.f32 %v2088_v26, %v2958_v22 }
 0x1be   : > { %v1625_v2 = vmax.f32 %v1609_v61, 0.0  ;;  %v1610_v5 = vadd.f32 %v2089_v11, %v2958_v22 }
 0x1bf   : > { %v1975_v49 = vpack.c.bf16 %v1627_v1, %v1627_v1  ;;  %v1628_v25 = vmax.f32 %v1612_v32, 0.0 }
 0x1c0   : > { %v1973_v43 = vpack.c.bf16 %v1625_v2, %v1625_v2  ;;  %v1626_v10 = vmax.f32 %v1610_v5, 0.0 }
 0x1c1   : > { %1708 = vst.msk [vmem:[%s2966_s5 + $0x18] sm:$0xf] %vm1701_vm8, %v1975_v49  ;;  %v1976_v9 = vpack.c.bf16 %v1628_v25, %v1628_v25 }
 0x1c2   : > { %1706 = vst.msk [vmem:[%s2966_s5 + $0x10] sm:$0xf] %vm1701_vm8, %v1973_v43  ;;  %v1974_v31 = vpack.c.bf16 %v1626_v10, %v1626_v10 }
 0x1c3   : > { %1709 = vst.msk [vmem:[%s2966_s5 + $0x1c] sm:$0xf] %vm1701_vm8, %v1976_v9 }
 0x1c4   : > { %1707 = vst.msk [vmem:[%s2966_s5 + $0x14] sm:$0xf] %vm1701_vm8, %v1974_v31 }
 0x1c7   : > { %v2052_v24 = vpop.f32.mrb[8].mxu1 }
 0x1c8   : > { %v2072_v47 = vpop.f32.mrb[8].mxu0  ;;  %v1149_v6 = vpop.f32.mrb[9].mxu1 }
 0x1c9   : > { %v1551_v51 = vpop.f32.mrb[9].mxu0  ;;  %v2090_v14 = vadd.f32 %v2072_v47, %v2052_v24  ;;  %v2053_v13 = vpop.f32.mrb[10].mxu1 }
 0x1ca   : > { %v2073_v54 = vpop.f32.mrb[10].mxu0  ;;  %v2091_v58 = vadd.f32 %v1551_v51, %v1149_v6  ;;  %v1152_v17 = vpop.f32.mrb[11].mxu1 }
 0x1cb   : > { %v1554_v16 = vpop.f32.mrb[11].mxu0  ;;  %v1615_v50 = vadd.f32 %v2090_v14, %v2958_v22  ;;  %v2092_v56 = vadd.f32 %v2073_v54, %v2053_v13 }
 0x1cc   : > { %v1613_v63 = vadd.f32 %v2091_v58, %v2958_v22  ;;  %v2093_v18 = vadd.f32 %v1554_v16, %v1152_v17 }
 0x1cd   : > { %v1631_v8 = vmax.f32 %v1615_v50, 0.0  ;;  %v1616_v55 = vadd.f32 %v2092_v56, %v2958_v22 }
 0x1ce   : > { %v1629_v19 = vmax.f32 %v1613_v63, 0.0  ;;  %v1614_v3 = vadd.f32 %v2093_v18, %v2958_v22 }
 0x1cf   : > { %v1979_v30 = vpack.c.bf16 %v1631_v8, %v1631_v8  ;;  %v1632_v36 = vmax.f32 %v1616_v55, 0.0 }
 0x1d0   : > { %v1977_v15 = vpack.c.bf16 %v1629_v19, %v1629_v19  ;;  %v1630_v20 = vmax.f32 %v1614_v3, 0.0 }
 0x1d1   : > { %1712 = vst.msk [vmem:[%s2966_s5 + $0x28] sm:$0xf] %vm1701_vm8, %v1979_v30  ;;  %v1980_v21 = vpack.c.bf16 %v1632_v36, %v1632_v36 }
 0x1d2   : > { %1710 = vst.msk [vmem:[%s2966_s5 + $0x20] sm:$0xf] %vm1701_vm8, %v1977_v15  ;;  %v1978_v7 = vpack.c.bf16 %v1630_v20, %v1630_v20 }
 0x1d3   : > { %1713 = vst.msk [vmem:[%s2966_s5 + $0x2c] sm:$0xf] %vm1701_vm8, %v1980_v21 }
 0x1d4   : > { %1711 = vst.msk [vmem:[%s2966_s5 + $0x24] sm:$0xf] %vm1701_vm8, %v1978_v7 }
 0x1d7   : > { %v2056_v28 = vpop.f32.mrb[12].mxu1 }
 0x1d8   : > { %v2076_v27 = vpop.f32.mrb[12].mxu0  ;;  %v1165_v33 = vpop.f32.mrb[13].mxu1 }
 0x1d9   : > { %v1567_v35 = vpop.f32.mrb[13].mxu0  ;;  %v2094_v0 = vadd.f32 %v2076_v27, %v2056_v28  ;;  %v2057_v37 = vpop.f32.mrb[14].mxu1 }
 0x1da   : > { %v2077_v34 = vpop.f32.mrb[14].mxu0  ;;  %v2095_v38 = vadd.f32 %v1567_v35, %v1165_v33  ;;  %v1168_v44 = vpop.f32.mrb[15].mxu1 }
 0x1db   : > { %v1570_v40 = vpop.f32.mrb[15].mxu0  ;;  %v1619_v41 = vadd.f32 %v2094_v0, %v2958_v22  ;;  %v2096_v12 = vadd.f32 %v2077_v34, %v2057_v37 }
 0x1dc   : > { %v1617_v60 = vadd.f32 %v2095_v38, %v2958_v22  ;;  %v2097_v23 = vadd.f32 %v1570_v40, %v1168_v44 }
 0x1dd   : > { %v1635_v46 = vmax.f32 %v1619_v41, 0.0  ;;  %v1620_v52 = vadd.f32 %v2096_v12, %v2958_v22 }
 0x1de   : > { %v1633_v48 = vmax.f32 %v1617_v60, 0.0  ;;  %v1618_v53 = vadd.f32 %v2097_v23, %v2958_v22 }
 0x1df   : > { %v1983_v42 = vpack.c.bf16 %v1635_v46, %v1635_v46  ;;  %v1636_v45 = vmax.f32 %v1620_v52, 0.0 }
 0x1e0   : > { %v1981_v62 = vpack.c.bf16 %v1633_v48, %v1633_v48  ;;  %v1634_v39 = vmax.f32 %v1618_v53, 0.0 }
 0x1e1   : > { %1716 = vst.msk [vmem:[%s2966_s5 + $0x38] sm:$0xf] %vm1701_vm8, %v1983_v42  ;;  %v1984_v29 = vpack.c.bf16 %v1636_v45, %v1636_v45 }
 0x1e2   : > { %1714 = vst.msk [vmem:[%s2966_s5 + $0x30] sm:$0xf] %vm1701_vm8, %v1981_v62  ;;  %v1982_v22 = vpack.c.bf16 %v1634_v39, %v1634_v39 }
 0x1e3   : > { %1717 = vst.msk [vmem:[%s2966_s5 + $0x3c] sm:$0xf] %vm1701_vm8, %v1984_v29 }
 0x1e4   : > { %1715 = vst.msk [vmem:[%s2966_s5 + $0x34] sm:$0xf] %vm1701_vm8, %v1982_v22 }
 0x1e5   : > { %2263 = shalt.err (!%p2260_p9)
}
 0x1e6   : > { %s2264_s14 = scalar_lea.hbm %s3012_s11, 1024  ;;  %s2268_s8 = scalar_lea.hbm %s3080_s4, 4096 }
 0x1e7   : > { %p2265_p10 = scmp.ne.s32.totalorder %s3012_s11, %s2264_s14  ;;  %p2269_p13 = scmp.lt.u32.totalorder %s3012_s11, %s3080_s4 }
 0x1e8   : > { %p2270_p0 = scmp.lt.u32.totalorder %s2268_s8, %s2264_s14  ;;  %p2272_p2 = scmp.lt.u32.totalorder %s2264_s14, %s3012_s11 }
 0x1e9   : > { %p2266_p11 = pnand %p2265_p10, %p2427_p3 }
 0x1ea   : > { %p2271_p1 = por %p2270_p0, %p2269_p13 }
 0x1eb   : > { %p2267_p12 = pneg %p2266_p11 }
 0x1ec   : > { %p2273_p4 = por %p2272_p2, %p2271_p1 }
 0x1ee   : > { %p2274_p5 = pnand %p2273_p4, %p2267_p12 }
 0x1f0   : > { %2277 = shalt.err (!%p2274_p5)
}
 0x1f1   : > { %s2349_s13 = smov 64   ;;  %s2350_s9 = smov 4  }
 0x1f2   : > { %2121 = dma.vmem_to_hbm [thread:$0]  (%p2427_p3), %s3014_s19, 1024, %s3012_s11, %s3024_s30, %s2349_s13, %s2349_s13, %s2350_s9  }
 0x1f3 PF: > { %p2127_p6 = scmp.ge.s32.totalorder %s2344_s22, 2  ;;  %s1750_s6 = sand.u32 1, %s2316_s15  }
 0x1f4   : > { %s1751_s23 = scalar_lea.sflag [#allocation4], %s1750_s6 }
 0x1f5   : > { %p2124_p7 = pnand %p2127_p6, %p2436_p8 }
 0x1f7   : > { %2311 = dma.done.wait (!%p2124_p7), %s1751_s23, 1024  }
 0x1f8   : > { %2313 = vsyncadd (!%p2124_p7), %s1751_s23, 4294966272  ;;  %s17_s22 = sadd.s32 1, %s2344_s22   ;;  %s3084_s15 = smov %s2320_s16 }
 0x1f9   : > { %p14_p9 = scmp.ge.s32.totalorder %s17_s22, 6   ;;  %s3085_s16 = smov %s2324_s17 }
 0x1fa   : > { %s3086_s17 = smov %s2445_s7  ;;  %s3087_s18 = smov %s2336_s20 }
 0x1fb   : > { %s3088_s19 = smov %s2340_s21  ;;  %s3089_s20 = smov %s3092_s25 }
 0x1fc   : > { %s3090_s21 = smov %s3096_s26  ;;  %16 = sbr.rel (!%p14_p9) target bundleno = 5 (0x5), region = 79 }
 0x203   :  { %1756 = vsyncpa [#allocation4], 1 }
 0x204   :  { %1758 = vsyncpa [#allocation4 + $0x1], 1 }

</bundles_post_ra>
